<compile_context>
chip_gen: v5e
topology: v5e:2x2
jax: 0.10.0
libtpu: 0.0.40
codegen_flags: <defaults>
</compile_context>

<pallas_src>
import functools

import jax
import jax.numpy as jnp
from jax.experimental import pallas as pl
from jax.experimental.pallas import tpu as pltpu


# ---------------------------------------------------------------------------
# Fused Pallas kernel: one grid step == one batch sample
# ---------------------------------------------------------------------------
def res_block_d_kernel(xph_ref, w1_ref, b1_ref, w2_ref, b2_ref, wr_ref, br_ref,
                       o_ref, a_scr, h1p_scr, b_scr):
    """Fused residual block for one sample.

    xph_ref : (4, Hp/2, Wp/2, Cin)   space-to-depth phases of the zero-padded
              input:  xph[p*2+q, i, j, c] == x_pad[2i+p, 2j+q, c]
    w1/w2   : (9*Cin,  Cout) bf16    im2col weights of conv1 / conv2(shortcut)
    wr      : (9*Cout, Cout) bf16    im2col weight of the stride-1 conv
    b*      : (1, Cout) f32          biases
    o_ref   : (Ho*Wo, Cout) f32      output rows of this sample
    a_scr   : (Ho, Wo, 9*Cin)  f32   im2col of x_pad (stride-2 taps)
    h1p_scr : (Ho+2, Wo+2, Cout) f32 zero-padded ReLU(conv1) staging buffer
    b_scr   : (Ho, Wo, 9*Cout) f32   im2col of padded ReLU(conv1) (stride-1)
    """
    hp2, wp2, cout = h1p_scr.shape
    ho, wo = hp2 - 2, wp2 - 2
    cin = xph_ref.shape[-1]
    m = ho * wo

    # --- im2col for the two stride-2 convs (single pass over x) -------------
    # Tap (kh, kw) of a stride-2 / pad-1 conv reads x_pad[2*oh+kh, 2*ow+kw]
    #  == phase[(kh%2)*2 + kw%2][oh + kh//2, ow + kw//2]   (contiguous slice)
    for kh in range(3):
        for kw in range(3):
            ph = (kh % 2) * 2 + (kw % 2)
            t = kh * 3 + kw
            a_scr[:, :, t * cin:(t + 1) * cin] = xph_ref[
                ph, kh // 2:kh // 2 + ho, kw // 2:kw // 2 + wo, :]

    a_raw = a_scr[...].reshape(m, 9 * cin)                   # x path (conv2)
    a_x = a_raw.astype(jnp.bfloat16)
    a_relu = jnp.maximum(a_raw, 0.0).astype(jnp.bfloat16)    # ReLU(x) path

    # conv1 (stride 2) + bias + ReLU  -- one MXU matmul, K = 9*Cin
    h1 = jnp.dot(a_relu, w1_ref[...], preferred_element_type=jnp.float32)
    h1 = jnp.maximum(h1 + b1_ref[...], 0.0)                  # (M, Cout) f32

    # conv2 shortcut (stride 2) + bias
    sc = jnp.dot(a_x, w2_ref[...], preferred_element_type=jnp.float32)
    sc = sc + b2_ref[...]

    # --- stage ReLU(conv1) in a zero-padded VMEM buffer (halo for conv) -----
    h1p_scr[...] = jnp.zeros(h1p_scr.shape, h1p_scr.dtype)
    h1p_scr[1:ho + 1, 1:wo + 1, :] = h1.reshape(ho, wo, cout)

    # --- im2col for the stride-1 conv ---------------------------------------
    for kh in range(3):
        for kw in range(3):
            t = kh * 3 + kw
            b_scr[:, :, t * cout:(t + 1) * cout] = h1p_scr[
                kh:kh + ho, kw:kw + wo, :]

    bmat = b_scr[...].reshape(m, 9 * cout).astype(jnp.bfloat16)
    res = jnp.dot(bmat, wr_ref[...], preferred_element_type=jnp.float32)
    res = res + br_ref[...]

    # residual + shortcut
    o_ref[...] = (res + sc).astype(o_ref.dtype)


# ---------------------------------------------------------------------------
# Wrapper: layout prep (NCHW->NHWC, pad, stride-2 phase split) + pallas_call
# ---------------------------------------------------------------------------
def res_block_d_forward(params, x_nchw):
    x = jnp.transpose(x_nchw, (0, 2, 3, 1)).astype(jnp.float32)   # -> NHWC
    n, h, w, cin = x.shape
    assert h % 2 == 0 and w % 2 == 0, "spatial dims must be even for stride 2"
    ho, wo = h // 2, w // 2
    cout = params['b1'].shape[-1]

    # zero-pad (pad=1) and split into the 4 stride-2 phases (space-to-depth);
    # this keeps every in-kernel im2col read a contiguous static slice.
    xp = jnp.pad(x, ((0, 0), (1, 1), (1, 1), (0, 0)))
    hp, wp = h + 2, w + 2
    xph = xp.reshape(n, hp // 2, 2, wp // 2, 2, cin)
    xph = xph.transpose(0, 2, 4, 1, 3, 5).reshape(n * 4, hp // 2, wp // 2, cin)

    out2d = pl.pallas_call(
        res_block_d_kernel,
        out_shape=jax.ShapeDtypeStruct((n * ho * wo, cout), jnp.float32),
        grid=(n,),
        in_specs=[
            pl.BlockSpec((4, hp // 2, wp // 2, cin), lambda i: (i, 0, 0, 0)),
            pl.BlockSpec((9 * cin, cout), lambda i: (0, 0)),
            pl.BlockSpec((1, cout), lambda i: (0, 0)),
            pl.BlockSpec((9 * cin, cout), lambda i: (0, 0)),
            pl.BlockSpec((1, cout), lambda i: (0, 0)),
            pl.BlockSpec((9 * cout, cout), lambda i: (0, 0)),
            pl.BlockSpec((1, cout), lambda i: (0, 0)),
        ],
        out_specs=pl.BlockSpec((ho * wo, cout), lambda i: (i, 0)),
        scratch_shapes=[
            pltpu.VMEM((ho, wo, 9 * cin), jnp.float32),
            pltpu.VMEM((ho + 2, wo + 2, cout), jnp.float32),
            pltpu.VMEM((ho, wo, 9 * cout), jnp.float32),
        ],
        compiler_params=pltpu.CompilerParams(
            dimension_semantics=("parallel",)),
    )(xph, params['w1m'], params['b1'], params['w2m'], params['b2'],
      params['wrm'], params['br'])

    out = out2d.reshape(n, ho, wo, cout)
    return jnp.transpose(out, (0, 3, 1, 2))                       # back to NCHW


# ---------------------------------------------------------------------------
# Parameter setup (Xavier-uniform + spectral norm), im2col weight layout
# ---------------------------------------------------------------------------
def xavier_uniform(key, shape_oikk):
    o, i, kh, kw = shape_oikk
    fan_in, fan_out = i * kh * kw, o * kh * kw
    bound = (6.0 / (fan_in + fan_out)) ** 0.5
    return jax.random.uniform(key, shape_oikk, jnp.float32, -bound, bound)


def spectral_normalize(w_oikk, key, iters=30):
    o = w_oikk.shape[0]
    wm = w_oikk.reshape(o, -1)
    u = jax.random.normal(key, (o,), jnp.float32)
    for _ in range(iters):
        v = wm.T @ u
        v = v / (jnp.linalg.norm(v) + 1e-12)
        u = wm @ v
        u = u / (jnp.linalg.norm(u) + 1e-12)
    sigma = u @ (wm @ v)
    return w_oikk / sigma


def init_params(key, in_ch, out_ch):
    ks = jax.random.split(key, 9)

    def make_conv(w_key, b_key, sn_key, o, i, k):
        w = xavier_uniform(w_key, (o, i, k, k))
        w = spectral_normalize(w, sn_key)                  # spectral_norm(conv)
        b_bound = 1.0 / (i * k * k) ** 0.5
        b = jax.random.uniform(b_key, (o,), jnp.float32, -b_bound, b_bound)
        # (O, I, kh, kw) -> (kh, kw, I, O) -> (k*k*I, O) im2col weight
        wm = jnp.transpose(w, (2, 3, 1, 0)).reshape(k * k * i, o)
        return wm, b.reshape(1, o)

    w1m, b1 = make_conv(ks[0], ks[1], ks[2], out_ch, in_ch, 3)    # conv1 (s=2)
    wrm, br = make_conv(ks[3], ks[4], ks[5], out_ch, out_ch, 3)   # conv  (s=1)
    w2m, b2 = make_conv(ks[6], ks[7], ks[8], out_ch, in_ch, 3)    # conv2 (s=2)

    return dict(
        w1m=w1m.astype(jnp.bfloat16), b1=b1,
        wrm=wrm.astype(jnp.bfloat16), br=br,
        w2m=w2m.astype(jnp.bfloat16), b2=b2,
    )


# ---------------------------------------------------------------------------
# Pure-JAX reference (same bf16 operand rounding, f32 accumulation)
# ---------------------------------------------------------------------------
def ref_forward(params, x_nchw):
    x = jnp.transpose(x_nchw, (0, 2, 3, 1)).astype(jnp.float32)
    cout = params['b1'].shape[-1]

    def conv(inp, wm, b, stride):
        k = wm.reshape(3, 3, -1, cout)                     # HWIO, bf16
        y = jax.lax.conv_general_dilated(
            inp.astype(jnp.bfloat16), k,
            window_strides=(stride, stride), padding=((1, 1), (1, 1)),
            dimension_numbers=('NHWC', 'HWIO', 'NHWC'),
            preferred_element_type=jnp.float32)
        return y + b.reshape(1, 1, 1, cout)

    h = jnp.maximum(x, 0.0)
    h = jnp.maximum(conv(h, params['w1m'], params['b1'], 2), 0.0)
    h = conv(h, params['wrm'], params['br'], 1)
    sc = conv(x, params['w2m'], params['b2'], 2)
    return jnp.transpose(h + sc, (0, 3, 1, 2))


if __name__ == "__main__":
    key = jax.random.PRNGKey(0)
    k_x, k_p = jax.random.split(key, 2)

    N, Cin, H, W = 2, 4, 16, 16
    Cout = 8

    x = jax.random.normal(k_x, (N, Cin, H, W), jnp.float32)       # NCHW input
    params = init_params(k_p, Cin, Cout)

    fwd = jax.jit(functools.partial(res_block_d_forward, params))
    out = fwd(x)
    jax.block_until_ready(out)

    assert out.shape == (N, Cout, H // 2, W // 2)
    assert out.dtype == jnp.float32

    ref = ref_forward(params, x)
    jax.block_until_ready(ref)
    assert bool(jnp.allclose(out, ref, rtol=2e-2, atol=2e-2)), "mismatch vs reference"

    print("KERNEL_OK")
</pallas_src>

<mosaic_0001>
module attributes {stable_mosaic.version = 11 : i64} {
  func.func @res_block_d_kernel(%arg0: i32, %arg1: memref<4x9x9x4xf32, #tpu.memory_space<vmem>>, %arg2: memref<36x8xbf16, #tpu.memory_space<vmem>>, %arg3: memref<1x8xf32, #tpu.memory_space<vmem>>, %arg4: memref<36x8xbf16, #tpu.memory_space<vmem>>, %arg5: memref<1x8xf32, #tpu.memory_space<vmem>>, %arg6: memref<72x8xbf16, #tpu.memory_space<vmem>>, %arg7: memref<1x8xf32, #tpu.memory_space<vmem>>, %arg8: memref<64x8xf32, #tpu.memory_space<vmem>>, %arg9: memref<8x8x36xf32, #tpu.memory_space<vmem>>, %arg10: memref<10x10x8xf32, #tpu.memory_space<vmem>>, %arg11: memref<8x8x72xf32, #tpu.memory_space<vmem>>) attributes {dimension_semantics = [#tpu.dimension_semantics<parallel>], iteration_bounds = array<i64: 2>, scalar_prefetch = 0 : i64, scratch_operands = 3 : i64, tpu.core_type = #tpu.core_type<tc>, window_params = [{transform_indices = @transform_0, window_bounds = array<i64: 4, 9, 9, 4>}, {pipeline_mode = #tpu.pipeline_mode<synchronous>, transform_indices = @transform_1, window_bounds = array<i64: 36, 8>}, {pipeline_mode = #tpu.pipeline_mode<synchronous>, transform_indices = @transform_2, window_bounds = array<i64: 1, 8>}, {pipeline_mode = #tpu.pipeline_mode<synchronous>, transform_indices = @transform_3, window_bounds = array<i64: 36, 8>}, {pipeline_mode = #tpu.pipeline_mode<synchronous>, transform_indices = @transform_4, window_bounds = array<i64: 1, 8>}, {pipeline_mode = #tpu.pipeline_mode<synchronous>, transform_indices = @transform_5, window_bounds = array<i64: 72, 8>}, {pipeline_mode = #tpu.pipeline_mode<synchronous>, transform_indices = @transform_6, window_bounds = array<i64: 1, 8>}, {transform_indices = @transform_7, window_bounds = array<i64: 64, 8>}]} {
    %c0 = arith.constant 0 : index
    %c0_0 = arith.constant 0 : index
    %c0_1 = arith.constant 0 : index
    %c0_2 = arith.constant 0 : index
    %0 = vector.load %arg1[%c0, %c0_0, %c0_1, %c0_2] : memref<4x9x9x4xf32, #tpu.memory_space<vmem>>, vector<1x8x8x4xf32>
    %1 = vector.shape_cast %0 : vector<1x8x8x4xf32> to vector<8x8x4xf32>
    %c0_3 = arith.constant 0 : index
    %c0_4 = arith.constant 0 : index
    %c0_5 = arith.constant 0 : index
    %2 = vector.load %arg9[%c0_3, %c0_4, %c0_5] : memref<8x8x36xf32, #tpu.memory_space<vmem>>, vector<8x8x4xf32>
    tpu.vector_store %arg9[%c0_3, %c0_4, %c0_5], %1 {strides = array<i32>} : memref<8x8x36xf32, #tpu.memory_space<vmem>>, vector<8x8x4xf32>,
    %c1 = arith.constant 1 : index
    %c0_6 = arith.constant 0 : index
    %c0_7 = arith.constant 0 : index
    %c0_8 = arith.constant 0 : index
    %3 = vector.load %arg1[%c1, %c0_6, %c0_7, %c0_8] : memref<4x9x9x4xf32, #tpu.memory_space<vmem>>, vector<1x8x8x4xf32>
    %4 = vector.shape_cast %3 : vector<1x8x8x4xf32> to vector<8x8x4xf32>
    %c0_9 = arith.constant 0 : index
    %c0_10 = arith.constant 0 : index
    %c4 = arith.constant 4 : index
    %5 = vector.load %arg9[%c0_9, %c0_10, %c4] : memref<8x8x36xf32, #tpu.memory_space<vmem>>, vector<8x8x4xf32>
    tpu.vector_store %arg9[%c0_9, %c0_10, %c4], %4 {strides = array<i32>} : memref<8x8x36xf32, #tpu.memory_space<vmem>>, vector<8x8x4xf32>,
    %c0_11 = arith.constant 0 : index
    %c0_12 = arith.constant 0 : index
    %c1_13 = arith.constant 1 : index
    %c0_14 = arith.constant 0 : index
    %6 = vector.load %arg1[%c0_11, %c0_12, %c1_13, %c0_14] : memref<4x9x9x4xf32, #tpu.memory_space<vmem>>, vector<1x8x8x4xf32>
    %7 = vector.shape_cast %6 : vector<1x8x8x4xf32> to vector<8x8x4xf32>
    %c0_15 = arith.constant 0 : index
    %c0_16 = arith.constant 0 : index
    %c8 = arith.constant 8 : index
    %8 = vector.load %arg9[%c0_15, %c0_16, %c8] : memref<8x8x36xf32, #tpu.memory_space<vmem>>, vector<8x8x4xf32>
    tpu.vector_store %arg9[%c0_15, %c0_16, %c8], %7 {strides = array<i32>} : memref<8x8x36xf32, #tpu.memory_space<vmem>>, vector<8x8x4xf32>,
    %c2 = arith.constant 2 : index
    %c0_17 = arith.constant 0 : index
    %c0_18 = arith.constant 0 : index
    %c0_19 = arith.constant 0 : index
    %9 = vector.load %arg1[%c2, %c0_17, %c0_18, %c0_19] : memref<4x9x9x4xf32, #tpu.memory_space<vmem>>, vector<1x8x8x4xf32>
    %10 = vector.shape_cast %9 : vector<1x8x8x4xf32> to vector<8x8x4xf32>
    %c0_20 = arith.constant 0 : index
    %c0_21 = arith.constant 0 : index
    %c12 = arith.constant 12 : index
    %11 = vector.load %arg9[%c0_20, %c0_21, %c12] : memref<8x8x36xf32, #tpu.memory_space<vmem>>, vector<8x8x4xf32>
    tpu.vector_store %arg9[%c0_20, %c0_21, %c12], %10 {strides = array<i32>} : memref<8x8x36xf32, #tpu.memory_space<vmem>>, vector<8x8x4xf32>,
    %c3 = arith.constant 3 : index
    %c0_22 = arith.constant 0 : index
    %c0_23 = arith.constant 0 : index
    %c0_24 = arith.constant 0 : index
    %12 = vector.load %arg1[%c3, %c0_22, %c0_23, %c0_24] : memref<4x9x9x4xf32, #tpu.memory_space<vmem>>, vector<1x8x8x4xf32>
    %13 = vector.shape_cast %12 : vector<1x8x8x4xf32> to vector<8x8x4xf32>
    %c0_25 = arith.constant 0 : index
    %c0_26 = arith.constant 0 : index
    %c16 = arith.constant 16 : index
    %14 = vector.load %arg9[%c0_25, %c0_26, %c16] : memref<8x8x36xf32, #tpu.memory_space<vmem>>, vector<8x8x4xf32>
    tpu.vector_store %arg9[%c0_25, %c0_26, %c16], %13 {strides = array<i32>} : memref<8x8x36xf32, #tpu.memory_space<vmem>>, vector<8x8x4xf32>,
    %c2_27 = arith.constant 2 : index
    %c0_28 = arith.constant 0 : index
    %c1_29 = arith.constant 1 : index
    %c0_30 = arith.constant 0 : index
    %15 = vector.load %arg1[%c2_27, %c0_28, %c1_29, %c0_30] : memref<4x9x9x4xf32, #tpu.memory_space<vmem>>, vector<1x8x8x4xf32>
    %16 = vector.shape_cast %15 : vector<1x8x8x4xf32> to vector<8x8x4xf32>
    %c0_31 = arith.constant 0 : index
    %c0_32 = arith.constant 0 : index
    %c20 = arith.constant 20 : index
    %17 = vector.load %arg9[%c0_31, %c0_32, %c20] : memref<8x8x36xf32, #tpu.memory_space<vmem>>, vector<8x8x4xf32>
    tpu.vector_store %arg9[%c0_31, %c0_32, %c20], %16 {strides = array<i32>} : memref<8x8x36xf32, #tpu.memory_space<vmem>>, vector<8x8x4xf32>,
    %c0_33 = arith.constant 0 : index
    %c1_34 = arith.constant 1 : index
    %c0_35 = arith.constant 0 : index
    %c0_36 = arith.constant 0 : index
    %18 = vector.load %arg1[%c0_33, %c1_34, %c0_35, %c0_36] : memref<4x9x9x4xf32, #tpu.memory_space<vmem>>, vector<1x8x8x4xf32>
    %19 = vector.shape_cast %18 : vector<1x8x8x4xf32> to vector<8x8x4xf32>
    %c0_37 = arith.constant 0 : index
    %c0_38 = arith.constant 0 : index
    %c24 = arith.constant 24 : index
    %20 = vector.load %arg9[%c0_37, %c0_38, %c24] : memref<8x8x36xf32, #tpu.memory_space<vmem>>, vector<8x8x4xf32>
    tpu.vector_store %arg9[%c0_37, %c0_38, %c24], %19 {strides = array<i32>} : memref<8x8x36xf32, #tpu.memory_space<vmem>>, vector<8x8x4xf32>,
    %c1_39 = arith.constant 1 : index
    %c1_40 = arith.constant 1 : index
    %c0_41 = arith.constant 0 : index
    %c0_42 = arith.constant 0 : index
    %21 = vector.load %arg1[%c1_39, %c1_40, %c0_41, %c0_42] : memref<4x9x9x4xf32, #tpu.memory_space<vmem>>, vector<1x8x8x4xf32>
    %22 = vector.shape_cast %21 : vector<1x8x8x4xf32> to vector<8x8x4xf32>
    %c0_43 = arith.constant 0 : index
    %c0_44 = arith.constant 0 : index
    %c28 = arith.constant 28 : index
    %23 = vector.load %arg9[%c0_43, %c0_44, %c28] : memref<8x8x36xf32, #tpu.memory_space<vmem>>, vector<8x8x4xf32>
    tpu.vector_store %arg9[%c0_43, %c0_44, %c28], %22 {strides = array<i32>} : memref<8x8x36xf32, #tpu.memory_space<vmem>>, vector<8x8x4xf32>,
    %c0_45 = arith.constant 0 : index
    %c1_46 = arith.constant 1 : index
    %c1_47 = arith.constant 1 : index
    %c0_48 = arith.constant 0 : index
    %24 = vector.load %arg1[%c0_45, %c1_46, %c1_47, %c0_48] : memref<4x9x9x4xf32, #tpu.memory_space<vmem>>, vector<1x8x8x4xf32>
    %25 = vector.shape_cast %24 : vector<1x8x8x4xf32> to vector<8x8x4xf32>
    %c0_49 = arith.constant 0 : index
    %c0_50 = arith.constant 0 : index
    %c32 = arith.constant 32 : index
    %26 = vector.load %arg9[%c0_49, %c0_50, %c32] : memref<8x8x36xf32, #tpu.memory_space<vmem>>, vector<8x8x4xf32>
    tpu.vector_store %arg9[%c0_49, %c0_50, %c32], %25 {strides = array<i32>} : memref<8x8x36xf32, #tpu.memory_space<vmem>>, vector<8x8x4xf32>,
    %c0_51 = arith.constant 0 : index
    %c0_52 = arith.constant 0 : index
    %c0_53 = arith.constant 0 : index
    %27 = vector.load %arg9[%c0_51, %c0_52, %c0_53] : memref<8x8x36xf32, #tpu.memory_space<vmem>>, vector<8x8x36xf32>
    %28 = vector.shape_cast %27 : vector<8x8x36xf32> to vector<64x36xf32>
    %29 = arith.truncf %28 : vector<64x36xf32> to vector<64x36xbf16>
    %cst = arith.constant 0.000000e+00 : f32
    %30 = vector.broadcast %cst : f32 to vector<64x36xf32>
    %31 = arith.maximumf %28, %30 : vector<64x36xf32>
    %32 = arith.truncf %31 : vector<64x36xf32> to vector<64x36xbf16>
    %c0_54 = arith.constant 0 : index
    %c0_55 = arith.constant 0 : index
    %33 = vector.load %arg2[%c0_54, %c0_55] : memref<36x8xbf16, #tpu.memory_space<vmem>>, vector<36x8xbf16>
    %cst_56 = arith.constant dense<0.000000e+00> : vector<64x8xf32>
    %34 = tpu.matmul %32, %33, %cst_56 {dimension_numbers = #tpu.dot_dimension_numbers<[1], [0], [0], [1], [0, 0, 1, 1], [], []>} : vector<64x36xbf16>, vector<36x8xbf16>, vector<64x8xf32> -> vector<64x8xf32>
    %c0_57 = arith.constant 0 : index
    %c0_58 = arith.constant 0 : index
    %35 = vector.load %arg3[%c0_57, %c0_58] : memref<1x8xf32, #tpu.memory_space<vmem>>, vector<1x8xf32>
    %36 = vector.broadcast %35 : vector<1x8xf32> to vector<64x8xf32>
    %37 = arith.addf %34, %36 : vector<64x8xf32>
    %cst_59 = arith.constant 0.000000e+00 : f32
    %38 = vector.broadcast %cst_59 : f32 to vector<64x8xf32>
    %39 = arith.maximumf %37, %38 : vector<64x8xf32>
    %c0_60 = arith.constant 0 : index
    %c0_61 = arith.constant 0 : index
    %40 = vector.load %arg4[%c0_60, %c0_61] : memref<36x8xbf16, #tpu.memory_space<vmem>>, vector<36x8xbf16>
    %cst_62 = arith.constant dense<0.000000e+00> : vector<64x8xf32>
    %41 = tpu.matmul %29, %40, %cst_62 {dimension_numbers = #tpu.dot_dimension_numbers<[1], [0], [0], [1], [0, 0, 1, 1], [], []>} : vector<64x36xbf16>, vector<36x8xbf16>, vector<64x8xf32> -> vector<64x8xf32>
    %c0_63 = arith.constant 0 : index
    %c0_64 = arith.constant 0 : index
    %42 = vector.load %arg5[%c0_63, %c0_64] : memref<1x8xf32, #tpu.memory_space<vmem>>, vector<1x8xf32>
    %43 = vector.broadcast %42 : vector<1x8xf32> to vector<64x8xf32>
    %44 = arith.addf %41, %43 : vector<64x8xf32>
    %cst_65 = arith.constant 0.000000e+00 : f32
    %45 = vector.broadcast %cst_65 : f32 to vector<10x10x8xf32>
    %c0_66 = arith.constant 0 : index
    %c0_67 = arith.constant 0 : index
    %c0_68 = arith.constant 0 : index
    %46 = vector.load %arg10[%c0_66, %c0_67, %c0_68] : memref<10x10x8xf32, #tpu.memory_space<vmem>>, vector<10x10x8xf32>
    tpu.vector_store %arg10[%c0_66, %c0_67, %c0_68], %45 {strides = array<i32>} : memref<10x10x8xf32, #tpu.memory_space<vmem>>, vector<10x10x8xf32>,
    %47 = vector.shape_cast %39 : vector<64x8xf32> to vector<8x8x8xf32>
    %c1_69 = arith.constant 1 : index
    %c1_70 = arith.constant 1 : index
    %c0_71 = arith.constant 0 : index
    %48 = vector.load %arg10[%c1_69, %c1_70, %c0_71] : memref<10x10x8xf32, #tpu.memory_space<vmem>>, vector<8x8x8xf32>
    tpu.vector_store %arg10[%c1_69, %c1_70, %c0_71], %47 {strides = array<i32>} : memref<10x10x8xf32, #tpu.memory_space<vmem>>, vector<8x8x8xf32>,
    %c0_72 = arith.constant 0 : index
    %c0_73 = arith.constant 0 : index
    %c0_74 = arith.constant 0 : index
    %49 = vector.load %arg10[%c0_72, %c0_73, %c0_74] : memref<10x10x8xf32, #tpu.memory_space<vmem>>, vector<8x8x8xf32>
    %c0_75 = arith.constant 0 : index
    %c0_76 = arith.constant 0 : index
    %c0_77 = arith.constant 0 : index
    %50 = vector.load %arg11[%c0_75, %c0_76, %c0_77] : memref<8x8x72xf32, #tpu.memory_space<vmem>>, vector<8x8x8xf32>
    tpu.vector_store %arg11[%c0_75, %c0_76, %c0_77], %49 {strides = array<i32>} : memref<8x8x72xf32, #tpu.memory_space<vmem>>, vector<8x8x8xf32>,
    %c0_78 = arith.constant 0 : index
    %c1_79 = arith.constant 1 : index
    %c0_80 = arith.constant 0 : index
    %51 = vector.load %arg10[%c0_78, %c1_79, %c0_80] : memref<10x10x8xf32, #tpu.memory_space<vmem>>, vector<8x8x8xf32>
    %c0_81 = arith.constant 0 : index
    %c0_82 = arith.constant 0 : index
    %c8_83 = arith.constant 8 : index
    %52 = vector.load %arg11[%c0_81, %c0_82, %c8_83] : memref<8x8x72xf32, #tpu.memory_space<vmem>>, vector<8x8x8xf32>
    tpu.vector_store %arg11[%c0_81, %c0_82, %c8_83], %51 {strides = array<i32>} : memref<8x8x72xf32, #tpu.memory_space<vmem>>, vector<8x8x8xf32>,
    %c0_84 = arith.constant 0 : index
    %c2_85 = arith.constant 2 : index
    %c0_86 = arith.constant 0 : index
    %53 = vector.load %arg10[%c0_84, %c2_85, %c0_86] : memref<10x10x8xf32, #tpu.memory_space<vmem>>, vector<8x8x8xf32>
    %c0_87 = arith.constant 0 : index
    %c0_88 = arith.constant 0 : index
    %c16_89 = arith.constant 16 : index
    %54 = vector.load %arg11[%c0_87, %c0_88, %c16_89] : memref<8x8x72xf32, #tpu.memory_space<vmem>>, vector<8x8x8xf32>
    tpu.vector_store %arg11[%c0_87, %c0_88, %c16_89], %53 {strides = array<i32>} : memref<8x8x72xf32, #tpu.memory_space<vmem>>, vector<8x8x8xf32>,
    %c1_90 = arith.constant 1 : index
    %c0_91 = arith.constant 0 : index
    %c0_92 = arith.constant 0 : index
    %55 = vector.load %arg10[%c1_90, %c0_91, %c0_92] : memref<10x10x8xf32, #tpu.memory_space<vmem>>, vector<8x8x8xf32>
    %c0_93 = arith.constant 0 : index
    %c0_94 = arith.constant 0 : index
    %c24_95 = arith.constant 24 : index
    %56 = vector.load %arg11[%c0_93, %c0_94, %c24_95] : memref<8x8x72xf32, #tpu.memory_space<vmem>>, vector<8x8x8xf32>
    tpu.vector_store %arg11[%c0_93, %c0_94, %c24_95], %55 {strides = array<i32>} : memref<8x8x72xf32, #tpu.memory_space<vmem>>, vector<8x8x8xf32>,
    %c1_96 = arith.constant 1 : index
    %c1_97 = arith.constant 1 : index
    %c0_98 = arith.constant 0 : index
    %57 = vector.load %arg10[%c1_96, %c1_97, %c0_98] : memref<10x10x8xf32, #tpu.memory_space<vmem>>, vector<8x8x8xf32>
    %c0_99 = arith.constant 0 : index
    %c0_100 = arith.constant 0 : index
    %c32_101 = arith.constant 32 : index
    %58 = vector.load %arg11[%c0_99, %c0_100, %c32_101] : memref<8x8x72xf32, #tpu.memory_space<vmem>>, vector<8x8x8xf32>
    tpu.vector_store %arg11[%c0_99, %c0_100, %c32_101], %57 {strides = array<i32>} : memref<8x8x72xf32, #tpu.memory_space<vmem>>, vector<8x8x8xf32>,
    %c1_102 = arith.constant 1 : index
    %c2_103 = arith.constant 2 : index
    %c0_104 = arith.constant 0 : index
    %59 = vector.load %arg10[%c1_102, %c2_103, %c0_104] : memref<10x10x8xf32, #tpu.memory_space<vmem>>, vector<8x8x8xf32>
    %c0_105 = arith.constant 0 : index
    %c0_106 = arith.constant 0 : index
    %c40 = arith.constant 40 : index
    %60 = vector.load %arg11[%c0_105, %c0_106, %c40] : memref<8x8x72xf32, #tpu.memory_space<vmem>>, vector<8x8x8xf32>
    tpu.vector_store %arg11[%c0_105, %c0_106, %c40], %59 {strides = array<i32>} : memref<8x8x72xf32, #tpu.memory_space<vmem>>, vector<8x8x8xf32>,
    %c2_107 = arith.constant 2 : index
    %c0_108 = arith.constant 0 : index
    %c0_109 = arith.constant 0 : index
    %61 = vector.load %arg10[%c2_107, %c0_108, %c0_109] : memref<10x10x8xf32, #tpu.memory_space<vmem>>, vector<8x8x8xf32>
    %c0_110 = arith.constant 0 : index
    %c0_111 = arith.constant 0 : index
    %c48 = arith.constant 48 : index
    %62 = vector.load %arg11[%c0_110, %c0_111, %c48] : memref<8x8x72xf32, #tpu.memory_space<vmem>>, vector<8x8x8xf32>
    tpu.vector_store %arg11[%c0_110, %c0_111, %c48], %61 {strides = array<i32>} : memref<8x8x72xf32, #tpu.memory_space<vmem>>, vector<8x8x8xf32>,
    %c2_112 = arith.constant 2 : index
    %c1_113 = arith.constant 1 : index
    %c0_114 = arith.constant 0 : index
    %63 = vector.load %arg10[%c2_112, %c1_113, %c0_114] : memref<10x10x8xf32, #tpu.memory_space<vmem>>, vector<8x8x8xf32>
    %c0_115 = arith.constant 0 : index
    %c0_116 = arith.constant 0 : index
    %c56 = arith.constant 56 : index
    %64 = vector.load %arg11[%c0_115, %c0_116, %c56] : memref<8x8x72xf32, #tpu.memory_space<vmem>>, vector<8x8x8xf32>
    tpu.vector_store %arg11[%c0_115, %c0_116, %c56], %63 {strides = array<i32>} : memref<8x8x72xf32, #tpu.memory_space<vmem>>, vector<8x8x8xf32>,
    %c2_117 = arith.constant 2 : index
    %c2_118 = arith.constant 2 : index
    %c0_119 = arith.constant 0 : index
    %65 = vector.load %arg10[%c2_117, %c2_118, %c0_119] : memref<10x10x8xf32, #tpu.memory_space<vmem>>, vector<8x8x8xf32>
    %c0_120 = arith.constant 0 : index
    %c0_121 = arith.constant 0 : index
    %c64 = arith.constant 64 : index
    %66 = vector.load %arg11[%c0_120, %c0_121, %c64] : memref<8x8x72xf32, #tpu.memory_space<vmem>>, vector<8x8x8xf32>
    tpu.vector_store %arg11[%c0_120, %c0_121, %c64], %65 {strides = array<i32>} : memref<8x8x72xf32, #tpu.memory_space<vmem>>, vector<8x8x8xf32>,
    %c0_122 = arith.constant 0 : index
    %c0_123 = arith.constant 0 : index
    %c0_124 = arith.constant 0 : index
    %67 = vector.load %arg11[%c0_122, %c0_123, %c0_124] : memref<8x8x72xf32, #tpu.memory_space<vmem>>, vector<8x8x72xf32>
    %68 = vector.shape_cast %67 : vector<8x8x72xf32> to vector<64x72xf32>
    %69 = arith.truncf %68 : vector<64x72xf32> to vector<64x72xbf16>
    %c0_125 = arith.constant 0 : index
    %c0_126 = arith.constant 0 : index
    %70 = vector.load %arg6[%c0_125, %c0_126] : memref<72x8xbf16, #tpu.memory_space<vmem>>, vector<72x8xbf16>
    %cst_127 = arith.constant dense<0.000000e+00> : vector<64x8xf32>
    %71 = tpu.matmul %69, %70, %cst_127 {dimension_numbers = #tpu.dot_dimension_numbers<[1], [0], [0], [1], [0, 0, 1, 1], [], []>} : vector<64x72xbf16>, vector<72x8xbf16>, vector<64x8xf32> -> vector<64x8xf32>
    %c0_128 = arith.constant 0 : index
    %c0_129 = arith.constant 0 : index
    %72 = vector.load %arg7[%c0_128, %c0_129] : memref<1x8xf32, #tpu.memory_space<vmem>>, vector<1x8xf32>
    %73 = vector.broadcast %72 : vector<1x8xf32> to vector<64x8xf32>
    %74 = arith.addf %71, %73 : vector<64x8xf32>
    %75 = arith.addf %74, %44 : vector<64x8xf32>
    %c0_130 = arith.constant 0 : index
    %c0_131 = arith.constant 0 : index
    %76 = vector.load %arg8[%c0_130, %c0_131] : memref<64x8xf32, #tpu.memory_space<vmem>>, vector<64x8xf32>
    tpu.vector_store %arg8[%c0_130, %c0_131], %75 {strides = array<i32>} : memref<64x8xf32, #tpu.memory_space<vmem>>, vector<64x8xf32>,
    return
  }
  func.func @transform_0(%arg0: i32) -> (i32, i32, i32, i32) {
    %c0_i32 = arith.constant 0 : i32
    %c0_i32_0 = arith.constant 0 : i32
    %c0_i32_1 = arith.constant 0 : i32
    %c0_i32_2 = arith.constant 0 : i32
    return %arg0, %c0_i32, %c0_i32_0, %c0_i32_1 : i32, i32, i32, i32
  }
  func.func @transform_1(%arg0: i32) -> (i32, i32) {
    %c0_i32 = arith.constant 0 : i32
    %c0_i32_0 = arith.constant 0 : i32
    %c0_i32_1 = arith.constant 0 : i32
    return %c0_i32, %c0_i32_0 : i32, i32
  }
  func.func @transform_2(%arg0: i32) -> (i32, i32) {
    %c0_i32 = arith.constant 0 : i32
    %c0_i32_0 = arith.constant 0 : i32
    %c0_i32_1 = arith.constant 0 : i32
    return %c0_i32, %c0_i32_0 : i32, i32
  }
  func.func @transform_3(%arg0: i32) -> (i32, i32) {
    %c0_i32 = arith.constant 0 : i32
    %c0_i32_0 = arith.constant 0 : i32
    %c0_i32_1 = arith.constant 0 : i32
    return %c0_i32, %c0_i32_0 : i32, i32
  }
  func.func @transform_4(%arg0: i32) -> (i32, i32) {
    %c0_i32 = arith.constant 0 : i32
    %c0_i32_0 = arith.constant 0 : i32
    %c0_i32_1 = arith.constant 0 : i32
    return %c0_i32, %c0_i32_0 : i32, i32
  }
  func.func @transform_5(%arg0: i32) -> (i32, i32) {
    %c0_i32 = arith.constant 0 : i32
    %c0_i32_0 = arith.constant 0 : i32
    %c0_i32_1 = arith.constant 0 : i32
    return %c0_i32, %c0_i32_0 : i32, i32
  }
  func.func @transform_6(%arg0: i32) -> (i32, i32) {
    %c0_i32 = arith.constant 0 : i32
    %c0_i32_0 = arith.constant 0 : i32
    %c0_i32_1 = arith.constant 0 : i32
    return %c0_i32, %c0_i32_0 : i32, i32
  }
  func.func @transform_7(%arg0: i32) -> (i32, i32) {
    %c0_i32 = arith.constant 0 : i32
    %c0_i32_0 = arith.constant 0 : i32
    return %arg0, %c0_i32 : i32, i32
  }
}

</mosaic_0001>

<bundles_post_ra>
// kernel: res_block_d_forward.1
= control target key start
LH: loop header
LB: loop body
LE: loop exit
PB: predicated region body
PF: predicated region fallthrough
CT: control target
= control target key end

     0   :  { %s1690_s24 = smov 0   ;;  %s2157_s0 = inlined_call_operand.vmem [shape: f32[8,9,9,4], index: 0, kind: input, shape index: {}]   ;;  %s2158_s1 = inlined_call_operand.vmem [shape: bf16[36,8], index: 1, kind: input, shape index: {}]   ;;  %s2159_s2 = inlined_call_operand.vmem [shape: f32[1,8], index: 2, kind: input, shape index: {}]   ;;  %s2160_s3 = inlined_call_operand.vmem [shape: bf16[36,8], index: 3, kind: input, shape index: {}]   ;;  %s2161_s4 = inlined_call_operand.vmem [shape: f32[1,8], index: 4, kind: input, shape index: {}]   ;;  %s2162_s5 = inlined_call_operand.vmem [shape: bf16[72,8], index: 5, kind: input, shape index: {}]   ;;  %s2163_s6 = inlined_call_operand.vmem [shape: f32[1,8], index: 6, kind: input, shape index: {}]   ;;  %s2164_s7 = inlined_call_operand.vmem [shape: f32[128,8], index: 7, kind: output, shape index: {}]  }
   0x1 LB: > { %s1480_s25 = sadd.s32 4294967295, %s1635_s24   ;;  %p1484_p0 = scmp.ge.s32.totalorder %s1635_s24, 1  ;;  %s1635_s24 = sphi %s1690_s24, %s17_s24  }
   0x2   : > { %p239_p1 = scmp.lt.s32.totalorder %s1635_s24, 3 }
   0x4   : > { %p240_p2 = pnand %p1484_p0, %p239_p1 }
   0x5   : > { %s1485_s26 = sshll.u32 (!%p240_p2), %s1480_s25, 2  ;;  %s1637_s8 = smov (!%p240_p2), 8  }
   0x6   : > { %243 = sbr.rel (%p240_p2) target bundleno = 760 (0x2f8), region = 48  ;;  %p273_p3 = scmp.lt.s32.totalorder (!%p240_p2), %s1485_s26, 7 }
   0x7   : > { %s1638_s9 = smov (!%p240_p2), 4   ;;  %s1639_s10 = smov (!%p240_p2), 12  }
   0x8   : > { %s1640_s11 = smov (!%p240_p2), 16   ;;  %s1641_s12 = smov (!%p240_p2), 20  }
   0x9   : > { %s1642_s13 = smov (!%p240_p2), 24   ;;  %s1643_s14 = smov (!%p240_p2), 28  }
   0xa   : > { %s1644_s15 = smov (!%p240_p2), 32   ;;  %s1649_s16 = smov (!%p240_p2), 64  }
   0xb   : > { %s2166_s26 = smov (!%p273_p3, %s1485_s26), 7  ;;  %vm294_vm0 = vcmask 31744   ;;  %vm344_vm1 = vcmask 64544   ;;  %vm393_vm2 = vcmask 97344   ;;  %vm443_vm3 = vcmask 130144   ;;  %v1594_v55 = vld [vmem:[%s2160_s3 + $0x8] sm:$0xff] }
   0xc   : > { %s1604_s27 = smul.u32 144, %s2166_s26  ;;  %v806_v44 = vld [vmem:[%s2160_s3 + $0x10] sm:$0x3]  ;;  %vm761_vm4 = vcmask 1041408   ;;  %v1592_v59 = vld [vmem:[%s2158_s1 + $0x8] sm:$0xff]  ;;  %v1593_v60 = vld [vmem:[%s2160_s3] sm:$0xff] }
   0xd   : > { %v820_v45 = vunpack.c.l.b16 %v806_v44  ;;  %v728_v46 = vld [vmem:[%s2158_s1 + $0x10] sm:$0x3]  ;;  %vm493_vm5 = vcmask 162944   ;;  %vm542_vm6 = vcmask 195744   ;;  %v1591_v63 = vld [vmem:[%s2158_s1] sm:$0xff]  ;;  %vm592_vm7 = vcmask 228544  }
   0xe   : > { %s1703_s30 = scalar_lea.vmem %s2157_s0, %s1604_s27  ;;  %v742_v49 = vunpack.c.l.b16 %v728_v46  ;;  %vm642_vm8 = vcmask 261344   ;;  %vm691_vm9 = vcmask 294144   ;;  %vm748_vm10 = vcmask 293888   ;;  %s1487_s23 = sshll.u32 %s1480_s25, 3 }
   0xf   : > { %v353_v0 = vld [vmem:[%s1703_s30 + $0x1] sm:$0xff]  ;;  %v1489_v1 = vld [vmem:[%s1703_s30 + $0x90] sm:$0xff]  ;;  %v823_v48 = vpack.c.b16 %v820_v45, %v820_v45  ;;  %vm870_vm11 = vcmask 64512   ;;  %vm872_vm12 = vcmask 58368   ;;  %vm957_vm13 = vcmask 130112   ;;  %p280_p4 = scmp.lt.s32.totalorder %s1487_s23, 15 }
  0x10   : > { %369 = vrot.lane.b32.xlu1 %v353_v0, %s1637_s8  ;;  %320 = vrot.lane.b32.xlu0 %v1489_v1, %s1638_s9  ;;  %v1497_v2 = vld [vmem:[%s1703_s30 + $0x120] sm:$0xff]  ;;  %v354_v3 = vld [vmem:[%s1703_s30 + $0x11] sm:$0xff]  ;;  %v745_v53 = vpack.c.b16 %v742_v49, %v742_v49  ;;  %vm1006_vm14 = vcmask 195712   ;;  %vm1055_vm15 = vcmask 261312  }
  0x11   : > { %419 = vrot.lane.b32.xlu2 %v1497_v2, %s1639_s10  ;;  %v1490_v4 = vld [vmem:[%s1703_s30 + $0xa0] sm:$0xff]  ;;  %v1498_v5 = vld [vmem:[%s1703_s30 + $0x130] sm:$0xff]  ;;  %v839_v52 = vsel %vm761_vm4, %v823_v48, 0  ;;  %s2168_s23 = smov (!%p280_p4, %s1487_s23), 15 }
  0x12   : > { %v1506_v6 = vld [vmem:[%s1703_s30 + $0x1c0] sm:$0xff]  ;;  %v1505_v7 = vld [vmem:[%s1703_s30 + $0x1b0] sm:$0xff]  ;;  %846 = vmatpush.bf16.msra.mxu1 %v839_v52  ;;  %v763_v54 = vsel %vm761_vm4, %v745_v53, 0  ;;  %vm1301_vm4 = vcmask 589312  }
  0x13   : > { %v1513_v8 = vld [vmem:[%s1703_s30 + $0x121] sm:$0xff]  ;;  %v1521_v9 = vld [vmem:[%s1703_s30 + $0x10] sm:$0xff]  ;;  %770 = vmatpush.bf16.msra.mxu0 %v763_v54 }
  0x14   : > { %v1514_v10 = vld [vmem:[%s1703_s30 + $0x131] sm:$0xff]  ;;  %v1522_v11 = vld [vmem:[%s1703_s30 + $0x20] sm:$0xff]  ;;  %296 = vst.msk [vmem:[#allocation2 + $0x8] sm:$0xff] %vm294_vm0, %v1521_v9 }
  0x15   : > { %v1530_v12 = vld [vmem:[%s1703_s30 + $0xb0] sm:$0xff]  ;;  %v1538_v13 = vld [vmem:[%s1703_s30 + $0x21] sm:$0xff]  ;;  %297 = vst.msk [vmem:[#allocation2 + $0x10] sm:$0xff] %vm294_vm0, %v1522_v11 }
  0x16   : > { %v1492_v14 = vld [vmem:[%s1703_s30 + $0xc0] sm:$0xff]  ;;  %v356_v15 = vld [vmem:[%s1703_s30 + $0x31] sm:$0xff]  ;;  %847 = vmatpush.bf16.msra.mxu1 %v1594_v55 }
  0x17   : > { %v1499_v16 = vld [vmem:[%s1703_s30 + $0x140] sm:$0xff]  ;;  %v1507_v17 = vld [vmem:[%s1703_s30 + $0x1d0] sm:$0xff]  ;;  %771 = vmatpush.bf16.msra.mxu0 %v1592_v59 }
  0x18   : > { %371 = vrot.lane.b32.xlu1 %v354_v3, %s1637_s8  ;;  %322 = vrot.lane.b32.xlu0 %v1490_v4, %s1638_s9  ;;  %v1500_v18 = vld [vmem:[%s1703_s30 + $0x150] sm:$0xff]  ;;  %v1508_v19 = vld [vmem:[%s1703_s30 + $0x1e0] sm:$0xff] }
  0x19   : > { %421 = vrot.lane.b32.xlu2 %v1498_v5, %s1639_s10  ;;  %v1516_v20 = vld [vmem:[%s1703_s30 + $0x151] sm:$0xff]  ;;  %v1515_v21 = vld [vmem:[%s1703_s30 + $0x141] sm:$0xff] }
  0x1a   : > { %v1523_v22 = vld [vmem:[%s1703_s30 + $0x30] sm:$0xff]  ;;  %v1524_v23 = vld [vmem:[%s1703_s30 + $0x40] sm:$0xff]  ;;  %848 = vmatpush.bf16.msra.mxu1 %v1593_v60 }
  0x1b   : > { %v1532_v24 = vld [vmem:[%s1703_s30 + $0xd0] sm:$0xff]  ;;  %v1540_v25 = vld [vmem:[%s1703_s30 + $0x41] sm:$0xff]  ;;  %298 = vst.msk [vmem:[#allocation2 + $0x18] sm:$0xff] %vm294_vm0, %v1523_v22  ;;  %772 = vmatpush.bf16.msra.mxu0 %v1591_v63 }
  0x1c   : > { %v286_v26 = vld [vmem:[%s1703_s30] sm:$0xff]  ;;  %v1525_v28 = vld [vmem:[%s1703_s30 + $0x50] sm:$0xff]  ;;  %299 = vst.msk [vmem:[#allocation2 + $0x20] sm:$0xff] %vm294_vm0, %v1524_v23 }
  0x1d   : > { %295 = vst.msk [vmem:[#allocation2] sm:$0xff] %vm294_vm0, %v286_v26  ;;  %v1494_v27 = vld [vmem:[%s1703_s30 + $0xe0] sm:$0xff]  ;;  %v358_v30 = vld [vmem:[%s1703_s30 + $0x51] sm:$0xff] }
  0x1e   : > { %v1526_v29 = vld [vmem:[%s1703_s30 + $0x60] sm:$0xff]  ;;  %300 = vst.msk [vmem:[#allocation2 + $0x28] sm:$0xff] %vm294_vm0, %v1525_v28  ;;  %v1502_v32 = vld [vmem:[%s1703_s30 + $0x170] sm:$0xff] }
  0x1f   : > { %301 = vst.msk [vmem:[#allocation2 + $0x30] sm:$0xff] %vm294_vm0, %v1526_v29  ;;  %v1501_v31 = vld [vmem:[%s1703_s30 + $0x160] sm:$0xff]  ;;  %v1509_v34 = vld [vmem:[%s1703_s30 + $0x1f0] sm:$0xff] }
  0x20   : > { %471 = vrot.lane.b32.xlu1 %v1506_v6, %s1640_s11  ;;  %469 = vrot.lane.b32.xlu0 %v1505_v7, %s1640_s11  ;;  %v1510_v35 = vld [vmem:[%s1703_s30 + $0x200] sm:$0xff]  ;;  %v1518_v38 = vld [vmem:[%s1703_s30 + $0x171] sm:$0xff] }
  0x21   : > { %518 = vrot.lane.b32.xlu2 %v1513_v8, %s1641_s12  ;;  %v1517_v36 = vld [vmem:[%s1703_s30 + $0x161] sm:$0xff]  ;;  %v1534_v42 = vld [vmem:[%s1703_s30 + $0xf0] sm:$0xff] }
  0x22   : > { %v1542_v47 = vld [vmem:[%s1703_s30 + $0x61] sm:$0xff]  ;;  %v1527_v58 = vld [vmem:[%s1703_s30 + $0x70] sm:$0xff] }
  0x23   : > { %v1496_v56 = vld [vmem:[%s1703_s30 + $0x100] sm:$0xff]  ;;  %302 = vst.msk [vmem:[#allocation2 + $0x38] sm:$0xff] %vm294_vm0, %v1527_v58  ;;  %v360_v0 = vld [vmem:[%s1703_s30 + $0x71] sm:$0xff]  ;;  %vm1104_vm0 = vcmask 326912  }
  0x24   : > { %v1503_v1 = vld [vmem:[%s1703_s30 + $0x180] sm:$0xff]  ;;  %v1511_v6 = vld [vmem:[%s1703_s30 + $0x210] sm:$0xff] }
  0x25   : > { %v1512_v7 = vld [vmem:[%s1703_s30 + $0x220] sm:$0xff] }
  0x26   : > { %v1544_v26 = vld [vmem:[%s1703_s30 + $0x81] sm:$0xff] }
  0x28   : > { %568 = vrot.lane.b32.xlu1 %v1521_v9, %s1642_s13  ;;  %520 = vrot.lane.b32.xlu0 %v1514_v10, %s1641_s12  ;;  %v1519_v9 = vld [vmem:[%s1703_s30 + $0x181] sm:$0xff] }
  0x29   : > { %570 = vrot.lane.b32.xlu2 %v1522_v11, %s1642_s13 }
  0x30   : > { %620 = vrot.lane.b32.xlu1 %v1530_v12, %s1643_s14  ;;  %618 = vrot.lane.b32.xlu0 %v1490_v4, %s1643_s14 }
  0x31   : > { %667 = vrot.lane.b32.xlu2 %v354_v3, %s1644_s15  ;;  %v1504_v3 = vld [vmem:[%s1703_s30 + $0x190] sm:$0xff] }
  0x38   : > { %324 = vrot.lane.b32.xlu1 %v1530_v12, %s1638_s9  ;;  %669 = vrot.lane.b32.xlu0 %v1538_v13, %s1644_s15  ;;  %v1520_v12 = vld [vmem:[%s1703_s30 + $0x191] sm:$0xff] }
  0x39   : > { %326 = vrot.lane.b32.xlu2 %v1492_v14, %s1638_s9 }
  0x40   : > { %375 = vrot.lane.b32.xlu1 %v356_v15, %s1637_s8  ;;  %373 = vrot.lane.b32.xlu0 %v1538_v13, %s1637_s8 }
  0x41   : > { %423 = vrot.lane.b32.xlu2 %v1499_v16, %s1639_s10 }
  0x48   : > { %473 = vrot.lane.b32.xlu1 %v1507_v17, %s1640_s11  ;;  %425 = vrot.lane.b32.xlu0 %v1500_v18, %s1639_s10  ;;  %v1536_v17 = vld [vmem:[%s1703_s30 + $0x110] sm:$0xff] }
  0x49   : > { %475 = vrot.lane.b32.xlu2 %v1508_v19, %s1640_s11 }
  0x50   : > { %524 = vrot.lane.b32.xlu1 %v1516_v20, %s1641_s12  ;;  %522 = vrot.lane.b32.xlu0 %v1515_v21, %s1641_s12 }
  0x51   : > { %572 = vrot.lane.b32.xlu2 %v1523_v22, %s1642_s13 }
  0x58   : > { %622 = vrot.lane.b32.xlu1 %v1492_v14, %s1643_s14  ;;  %574 = vrot.lane.b32.xlu0 %v1524_v23, %s1642_s13  ;;  %v1528_v14 = vld [vmem:[%s1703_s30 + $0x80] sm:$0xff]  ;;  %s1646_s30 = smov 48  }
  0x59   : > { %624 = vrot.lane.b32.xlu2 %v1532_v24, %s1643_s14 }
  0x60   : > { %673 = vrot.lane.b32.xlu1 %v1540_v25, %s1644_s15  ;;  %671 = vrot.lane.b32.xlu0 %v356_v15, %s1644_s15 }
  0x61   : > { %328 = vrot.lane.b32.xlu2 %v1532_v24, %s1638_s9 }
  0x68   : > { %330 = vrot.lane.b32.xlu0 %v1494_v27, %s1638_s9  ;;  %377 = vrot.lane.b32.xlu1 %v1540_v25, %s1637_s8 }
  0x69   : > { %379 = vrot.lane.b32.xlu2 %v358_v30, %s1637_s8 }
  0x6b   : > { %v420_v33 = vpop.permute.xlu2 %419 }
  0x70   : > { %427 = vrot.lane.b32.xlu0 %v1501_v31, %s1639_s10  ;;  %429 = vrot.lane.b32.xlu1 %v1502_v32, %s1639_s10 }
  0x71   : > { %477 = vrot.lane.b32.xlu2 %v1509_v34, %s1640_s11 }
  0x73   : > { %v422_v37 = vpop.permute.xlu2 %421 }
  0x78   : > { %479 = vrot.lane.b32.xlu0 %v1510_v35, %s1640_s11  ;;  %526 = vrot.lane.b32.xlu1 %v1517_v36, %s1641_s12 }
  0x79   : > { %528 = vrot.lane.b32.xlu2 %v1518_v38, %s1641_s12 }
  0x7b   : > { %v519_v39 = vpop.permute.xlu2 %518 }
  0x80   : > { %576 = vrot.lane.b32.xlu0 %v1525_v28, %s1642_s13  ;;  %578 = vrot.lane.b32.xlu1 %v1526_v29, %s1642_s13 }
  0x81   : > { %626 = vrot.lane.b32.xlu2 %v1494_v27, %s1643_s14 }
  0x82   : > { %v370_v40 = vpop.permute.xlu1 %369  ;;  %v321_v41 = vpop.permute.xlu0 %320 }
  0x83   : > { %345 = vst.msk [vmem:[#allocation2] sm:$0xff] %vm344_vm1, %v321_v41  ;;  %v571_v43 = vpop.permute.xlu2 %570 }
  0x84   : > { %394 = vst.msk [vmem:[#allocation2] sm:$0xff] %vm393_vm2, %v370_v40 }
  0x85   : > { %444 = vst.msk [vmem:[#allocation2] sm:$0xff] %vm443_vm3, %v420_v33 }
  0x88   : > { %628 = vrot.lane.b32.xlu0 %v1534_v42, %s1643_s14  ;;  %675 = vrot.lane.b32.xlu1 %v358_v30, %s1644_s15 }
  0x89   : > { %677 = vrot.lane.b32.xlu2 %v1542_v47, %s1644_s15 }
  0x8a   : > { %v372_v50 = vpop.permute.xlu1 %371  ;;  %v323_v51 = vpop.permute.xlu0 %322 }
  0x8b   : > { %346 = vst.msk [vmem:[#allocation2 + $0x8] sm:$0xff] %vm344_vm1, %v323_v51  ;;  %v668_v57 = vpop.permute.xlu2 %667 }
  0x8c   : > { %395 = vst.msk [vmem:[#allocation2 + $0x8] sm:$0xff] %vm393_vm2, %v372_v50 }
  0x8d   : > { %445 = vst.msk [vmem:[#allocation2 + $0x8] sm:$0xff] %vm443_vm3, %v422_v37 }
  0x90   : > { %332 = vrot.lane.b32.xlu0 %v1534_v42, %s1638_s9  ;;  %334 = vrot.lane.b32.xlu1 %v1496_v56, %s1638_s9  ;;  %s1647_s9 = smov 56  }
  0x91   : > { %381 = vrot.lane.b32.xlu2 %v1542_v47, %s1637_s8 }
  0x92   : > { %v472_v61 = vpop.permute.xlu1 %471  ;;  %v470_v62 = vpop.permute.xlu0 %469 }
  0x93   : > { %495 = vst.msk [vmem:[#allocation2 + $0x8] sm:$0xff] %vm493_vm5, %v472_v61  ;;  %v327_v2 = vpop.permute.xlu2 %326 }
  0x94   : > { %494 = vst.msk [vmem:[#allocation2] sm:$0xff] %vm493_vm5, %v470_v62 }
  0x95   : > { %543 = vst.msk [vmem:[#allocation2] sm:$0xff] %vm542_vm6, %v519_v39 }
  0x96   : > { %348 = vst.msk [vmem:[#allocation2 + $0x18] sm:$0xff] %vm344_vm1, %v327_v2 }
  0x98   : > { %383 = vrot.lane.b32.xlu0 %v360_v0, %s1637_s8  ;;  %431 = vrot.lane.b32.xlu1 %v1503_v1, %s1639_s10 }
  0x99   : > { %433 = vrot.lane.b32.xlu2 %v1504_v3, %s1639_s10 }
  0x9a   : > { %v569_v4 = vpop.permute.xlu1 %568  ;;  %v521_v5 = vpop.permute.xlu0 %520 }
  0x9b   : > { %593 = vst.msk [vmem:[#allocation2] sm:$0xff] %vm592_vm7, %v569_v4  ;;  %v424_v8 = vpop.permute.xlu2 %423 }
  0x9c   : > { %544 = vst.msk [vmem:[#allocation2 + $0x8] sm:$0xff] %vm542_vm6, %v521_v5  ;;  %v1645_v5 = vmov 0.0  }
  0x9d   : > { %594 = vst.msk [vmem:[#allocation2 + $0x8] sm:$0xff] %vm592_vm7, %v571_v43 }
  0x9e   : > { %871 = vst.msk [vmem:[#allocation3] sm:$0xff] %vm870_vm11, %v1645_v5 }
  0x9f   : > { %873 = vst.msk [vmem:[#allocation3 + $0x8] sm:$0x3] %vm872_vm12, %v1645_v5 }
  0xa0   : > { %481 = vrot.lane.b32.xlu0 %v1511_v6, %s1640_s11  ;;  %483 = vrot.lane.b32.xlu1 %v1512_v7, %s1640_s11  ;;  %874 = vst.msk [vmem:[#allocation3 + $0x10] sm:$0xff] %vm870_vm11, %v1645_v5 }
  0xa1   : > { %530 = vrot.lane.b32.xlu2 %v1519_v9, %s1641_s12  ;;  %875 = vst.msk [vmem:[#allocation3 + $0x18] sm:$0x3] %vm872_vm12, %v1645_v5 }
  0xa2   : > { %v621_v10 = vpop.permute.xlu1 %620  ;;  %v619_v11 = vpop.permute.xlu0 %618  ;;  %876 = vst.msk [vmem:[#allocation3 + $0x20] sm:$0xff] %vm870_vm11, %v1645_v5 }
  0xa3   : > { %644 = vst.msk [vmem:[#allocation2 + $0x8] sm:$0xff] %vm642_vm8, %v621_v10  ;;  %v476_v13 = vpop.permute.xlu2 %475 }
  0xa4   : > { %643 = vst.msk [vmem:[#allocation2] sm:$0xff] %vm642_vm8, %v619_v11 }
  0xa5   : > { %692 = vst.msk [vmem:[#allocation2] sm:$0xff] %vm691_vm9, %v668_v57 }
  0xa6   : > { %v917_v9 = vld [vmem:[#allocation3 + $0x1] sm:$0xff]  ;;  %877 = vst.msk [vmem:[#allocation3 + $0x28] sm:$0x3] %vm872_vm12, %v1645_v5 }
  0xa7   : > { %v966_v10 = vld [vmem:[#allocation3 + $0x2] sm:$0xff]  ;;  %878 = vst.msk [vmem:[#allocation3 + $0x30] sm:$0xff] %vm870_vm11, %v1645_v5 }
  0xa8   : > { %532 = vrot.lane.b32.xlu0 %v1520_v12, %s1641_s12  ;;  %580 = vrot.lane.b32.xlu1 %v1527_v58, %s1642_s13  ;;  %879 = vst.msk [vmem:[#allocation3 + $0x38] sm:$0x3] %vm872_vm12, %v1645_v5 }
  0xa9   : > { %582 = vrot.lane.b32.xlu2 %v1528_v14, %s1642_s13  ;;  %880 = vst.msk [vmem:[#allocation3 + $0x40] sm:$0xff] %vm870_vm11, %v1645_v5 }
  0xaa   : > { %v325_v15 = vpop.permute.xlu1 %324  ;;  %v670_v16 = vpop.permute.xlu0 %669  ;;  %881 = vst.msk [vmem:[#allocation3 + $0x48] sm:$0x3] %vm872_vm12, %v1645_v5 }
  0xab   : > { %347 = vst.msk [vmem:[#allocation2 + $0x10] sm:$0xff] %vm344_vm1, %v325_v15  ;;  %v573_v18 = vpop.permute.xlu2 %572 }
  0xac   : > { %693 = vst.msk [vmem:[#allocation2 + $0x8] sm:$0xff] %vm691_vm9, %v670_v16  ;;  %v700_v19 = vld [vmem:[#allocation2] sm:$0xff] }
  0xad   : > { %v712_v22 = vmax.f32 %v700_v19, 0.0  ;;  %882 = vst.msk [vmem:[#allocation3 + $0x50] sm:$0xff] %vm870_vm11, %v1645_v5 }
  0xae   : > { %883 = vst.msk [vmem:[#allocation3 + $0x58] sm:$0x3] %vm872_vm12, %v1645_v5 }
  0xaf   : > { %884 = vst.msk [vmem:[#allocation3 + $0x60] sm:$0xff] %vm870_vm11, %v1645_v5 }
  0xb0   : > { %630 = vrot.lane.b32.xlu0 %v1496_v56, %s1643_s14  ;;  %632 = vrot.lane.b32.xlu1 %v1536_v17, %s1643_s14  ;;  %885 = vst.msk [vmem:[#allocation3 + $0x68] sm:$0x3] %vm872_vm12, %v1645_v5  ;;  %s1648_s14 = smov 40  }
  0xb1   : > { %679 = vrot.lane.b32.xlu2 %v360_v0, %s1644_s15  ;;  %886 = vst.msk [vmem:[#allocation3 + $0x70] sm:$0xff] %vm870_vm11, %v1645_v5 }
  0xb2   : > { %v376_v20 = vpop.permute.xlu1 %375  ;;  %v374_v21 = vpop.permute.xlu0 %373  ;;  %887 = vst.msk [vmem:[#allocation3 + $0x78] sm:$0x3] %vm872_vm12, %v1645_v5 }
  0xb3   : > { %397 = vst.msk [vmem:[#allocation2 + $0x18] sm:$0xff] %vm393_vm2, %v376_v20  ;;  %v701_v23 = vld [vmem:[#allocation2 + $0x8] sm:$0xff]  ;;  %v625_v27 = vpop.permute.xlu2 %624 }
  0xb4   : > { %396 = vst.msk [vmem:[#allocation2 + $0x10] sm:$0xff] %vm393_vm2, %v374_v21  ;;  %v708_v24 = vpack.c.bf16 %v701_v23, %v700_v19  ;;  %v713_v25 = vmax.f32 %v701_v23, 0.0 }
  0xb5   : > { %446 = vst.msk [vmem:[#allocation2 + $0x10] sm:$0xff] %vm443_vm3, %v424_v8 }
  0xb6   : > { %1565 = vmatmul.msk.bf16.vlgmr.msra.gmra.mxu1 %vm748_vm10, %v708_v24  ;;  %v720_v28 = vpack.c.bf16 %v713_v25, %v712_v22  ;;  %888 = vst.msk [vmem:[#allocation3 + $0x80] sm:$0xff] %vm870_vm11, %v1645_v5  ;;  %v1943_v24 = vld [vmem:[%s2159_s2] ss:$0 sm:$0xff] }
  0xb7   : > { %889 = vst.msk [vmem:[#allocation3 + $0x88] sm:$0x3] %vm872_vm12, %v1645_v5 }
  0xb8   : > { %1553 = vmatmul.msk.bf16.vlgmr.msra.gmra.mxu0 %vm748_vm10, %v720_v28  ;;  %681 = vrot.lane.b32.xlu0 %v1544_v26, %s1644_s15  ;;  %890 = vst.msk [vmem:[#allocation3 + $0x90] sm:$0xff] %vm870_vm11, %v1645_v5 }
  0xb9   : > { %982 = vrot.lane.b32.xlu1 %v966_v10, %s1640_s11  ;;  %891 = vst.msk [vmem:[#allocation3 + $0x98] sm:$0x3] %vm872_vm12, %v1645_v5 }
  0xba   : > { %v474_v29 = vpop.permute.xlu1 %473  ;;  %v426_v30 = vpop.permute.xlu0 %425 }
  0xbb   : > { %496 = vst.msk [vmem:[#allocation2 + $0x10] sm:$0xff] %vm493_vm5, %v474_v29  ;;  %v329_v31 = vpop.permute.xlu2 %328 }
  0xbc   : > { %447 = vst.msk [vmem:[#allocation2 + $0x18] sm:$0xff] %vm443_vm3, %v426_v30 }
  0xbd   : > { %497 = vst.msk [vmem:[#allocation2 + $0x18] sm:$0xff] %vm493_vm5, %v476_v13 }
  0xbe   : > { %349 = vst.msk [vmem:[#allocation2 + $0x20] sm:$0xff] %vm344_vm1, %v329_v31 }
  0xbf   : > { %v1170_v20 = vld [vmem:[#allocation3 + $0x90] sm:$0xff] }
  0xc0   : > { %933 = vrot.lane.b32.xlu0 %v917_v9, %s1637_s8  ;;  %1193 = vrot.lane.b32.xlu2 %v1170_v20, %s1646_s30  ;;  %v1219_v22 = vld [vmem:[#allocation3 + $0x91] sm:$0xff] }
  0xc2   : > { %v525_v32 = vpop.permute.xlu1 %524  ;;  %v523_v33 = vpop.permute.xlu0 %522 }
  0xc3   : > { %546 = vst.msk [vmem:[#allocation2 + $0x18] sm:$0xff] %vm542_vm6, %v525_v32  ;;  %v380_v34 = vpop.permute.xlu2 %379 }
  0xc4   : > { %545 = vst.msk [vmem:[#allocation2 + $0x10] sm:$0xff] %vm542_vm6, %v523_v33 }
  0xc5   : > { %595 = vst.msk [vmem:[#allocation2 + $0x10] sm:$0xff] %vm592_vm7, %v573_v18 }
  0xc8   : > { %1242 = vrot.lane.b32.xlu0 %v1219_v22, %s1647_s9 }
  0xca   : > { %v623_v35 = vpop.permute.xlu1 %622  ;;  %v575_v36 = vpop.permute.xlu0 %574 }
  0xcb   : > { %645 = vst.msk [vmem:[#allocation2 + $0x10] sm:$0xff] %vm642_vm8, %v623_v35  ;;  %v478_v39 = vpop.permute.xlu2 %477 }
  0xcc   : > { %596 = vst.msk [vmem:[#allocation2 + $0x18] sm:$0xff] %vm592_vm7, %v575_v36 }
  0xcd   : > { %646 = vst.msk [vmem:[#allocation2 + $0x18] sm:$0xff] %vm642_vm8, %v625_v27 }
  0xd2   : > { %v674_v37 = vpop.permute.xlu1 %673  ;;  %v672_v38 = vpop.permute.xlu0 %671 }
  0xd3   : > { %695 = vst.msk [vmem:[#allocation2 + $0x18] sm:$0xff] %vm691_vm9, %v674_v37  ;;  %v529_v47 = vpop.permute.xlu2 %528 }
  0xd4   : > { %694 = vst.msk [vmem:[#allocation2 + $0x10] sm:$0xff] %vm691_vm9, %v672_v38 }
  0xda   : > { %v331_v40 = vpop.permute.xlu0 %330  ;;  %v378_v41 = vpop.permute.xlu1 %377  ;;  %v703_v42 = vld [vmem:[#allocation2 + $0x18] sm:$0xff] }
  0xdb   : > { %350 = vst.msk [vmem:[#allocation2 + $0x28] sm:$0xff] %vm344_vm1, %v331_v40  ;;  %v702_v43 = vld [vmem:[#allocation2 + $0x10] sm:$0xff]  ;;  %v715_v44 = vmax.f32 %v703_v42, 0.0  ;;  %v627_v51 = vpop.permute.xlu2 %626 }
  0xdc   : > { %399 = vst.msk [vmem:[#allocation2 + $0x28] sm:$0xff] %vm393_vm2, %v380_v34  ;;  %v709_v45 = vpack.c.bf16 %v703_v42, %v702_v43  ;;  %v714_v46 = vmax.f32 %v702_v43, 0.0 }
  0xdd   : > { %398 = vst.msk [vmem:[#allocation2 + $0x20] sm:$0xff] %vm393_vm2, %v378_v41 }
  0xde   : > { %1566 = vmatmul.msk.bf16.gmra.mxu1 %vm748_vm10, %v709_v45  ;;  %v721_v48 = vpack.c.bf16 %v715_v44, %v714_v46 }
  0xe0   : > { %1554 = vmatmul.msk.bf16.gmra.mxu0 %vm748_vm10, %v721_v48 }
  0xe2   : > { %v428_v49 = vpop.permute.xlu0 %427  ;;  %v430_v50 = vpop.permute.xlu1 %429 }
  0xe3   : > { %448 = vst.msk [vmem:[#allocation2 + $0x20] sm:$0xff] %vm443_vm3, %v428_v49  ;;  %v678_v54 = vpop.permute.xlu2 %677 }
  0xe4   : > { %498 = vst.msk [vmem:[#allocation2 + $0x20] sm:$0xff] %vm493_vm5, %v478_v39 }
  0xe5   : > { %449 = vst.msk [vmem:[#allocation2 + $0x28] sm:$0xff] %vm443_vm3, %v430_v50 }
  0xea   : > { %v480_v52 = vpop.permute.xlu0 %479  ;;  %v527_v53 = vpop.permute.xlu1 %526 }
  0xeb   : > { %499 = vst.msk [vmem:[#allocation2 + $0x28] sm:$0xff] %vm493_vm5, %v480_v52  ;;  %v382_v57 = vpop.permute.xlu2 %381  ;;  %v901_v52 = vld [vmem:[#allocation3] sm:$0xff] }
  0xec   : > { %548 = vst.msk [vmem:[#allocation2 + $0x28] sm:$0xff] %vm542_vm6, %v529_v47 }
  0xed   : > { %547 = vst.msk [vmem:[#allocation2 + $0x20] sm:$0xff] %vm542_vm6, %v527_v53 }
  0xee   : > { %909 = vst.msk [vmem:[#allocation4] sm:$0xff] %vm870_vm11, %v901_v52 }
  0xf2   : > { %v577_v55 = vpop.permute.xlu0 %576  ;;  %v579_v56 = vpop.permute.xlu1 %578 }
  0xf3   : > { %597 = vst.msk [vmem:[#allocation2 + $0x20] sm:$0xff] %vm592_vm7, %v577_v55  ;;  %v434_v63 = vpop.permute.xlu2 %433 }
  0xf4   : > { %647 = vst.msk [vmem:[#allocation2 + $0x20] sm:$0xff] %vm642_vm8, %v627_v51 }
  0xf5   : > { %598 = vst.msk [vmem:[#allocation2 + $0x28] sm:$0xff] %vm592_vm7, %v579_v56 }
  0xfa   : > { %v629_v58 = vpop.permute.xlu0 %628  ;;  %v676_v59 = vpop.permute.xlu1 %675 }
  0xfb   : > { %648 = vst.msk [vmem:[#allocation2 + $0x28] sm:$0xff] %vm642_vm8, %v629_v58  ;;  %v531_v8 = vpop.permute.xlu2 %530 }
  0xfc   : > { %697 = vst.msk [vmem:[#allocation2 + $0x28] sm:$0xff] %vm691_vm9, %v678_v54 }
  0xfd   : > { %696 = vst.msk [vmem:[#allocation2 + $0x20] sm:$0xff] %vm691_vm9, %v676_v59 }
 0x102   : > { %v333_v60 = vpop.permute.xlu0 %332  ;;  %v335_v61 = vpop.permute.xlu1 %334 }
 0x103   : > { %351 = vst.msk [vmem:[#allocation2 + $0x30] sm:$0xff] %vm344_vm1, %v333_v60  ;;  %v705_v62 = vld [vmem:[#allocation2 + $0x28] sm:$0xff]  ;;  %v583_v13 = vpop.permute.xlu2 %582 }
 0x104   : > { %v704_v0 = vld [vmem:[#allocation2 + $0x20] sm:$0xff]  ;;  %v717_v1 = vmax.f32 %v705_v62, 0.0  ;;  %352 = vst.msk [vmem:[#allocation2 + $0x38] sm:$0xff] %vm344_vm1, %v335_v61  ;;  %vm1153_vm1 = vcmask 392512  }
 0x105   : > { %v710_v2 = vpack.c.bf16 %v705_v62, %v704_v0  ;;  %v716_v3 = vmax.f32 %v704_v0, 0.0  ;;  %400 = vst.msk [vmem:[#allocation2 + $0x30] sm:$0xff] %vm393_vm2, %v382_v57 }
 0x107   : > { %1567 = vmatmul.msk.bf16.gmra.mxu1 %vm748_vm10, %v710_v2  ;;  %v722_v4 = vpack.c.bf16 %v717_v1, %v716_v3 }
 0x109   : > { %1555 = vmatmul.msk.bf16.gmra.mxu0 %vm748_vm10, %v722_v4 }
 0x10a   : > { %v384_v6 = vpop.permute.xlu0 %383  ;;  %v432_v7 = vpop.permute.xlu1 %431 }
 0x10b   : > { %401 = vst.msk [vmem:[#allocation2 + $0x38] sm:$0xff] %vm393_vm2, %v384_v6  ;;  %v680_v16 = vpop.permute.xlu2 %679  ;;  %vm1203_vm2 = vcmask 458112  }
 0x10c   : > { %450 = vst.msk [vmem:[#allocation2 + $0x30] sm:$0xff] %vm443_vm3, %v432_v7 }
 0x10d   : > { %451 = vst.msk [vmem:[#allocation2 + $0x38] sm:$0xff] %vm443_vm3, %v434_v63  ;;  %vm1252_vm3 = vcmask 523712  }
 0x112   : > { %v482_v11 = vpop.permute.xlu0 %481  ;;  %v484_v12 = vpop.permute.xlu1 %483 }
 0x113   : > { %500 = vst.msk [vmem:[#allocation2 + $0x30] sm:$0xff] %vm493_vm5, %v482_v11 }
 0x114   : > { %501 = vst.msk [vmem:[#allocation2 + $0x38] sm:$0xff] %vm493_vm5, %v484_v12  ;;  %vm1375_vm5 = vcmask 1043456  }
 0x115   : > { %549 = vst.msk [vmem:[#allocation2 + $0x30] sm:$0xff] %vm542_vm6, %v531_v8 }
 0x11a   : > { %v533_v14 = vpop.permute.xlu0 %532  ;;  %v581_v15 = vpop.permute.xlu1 %580 }
 0x11b   : > { %550 = vst.msk [vmem:[#allocation2 + $0x38] sm:$0xff] %vm542_vm6, %v533_v14  ;;  %v1996_v0 = vpop.permute.xlu2 %1193  ;;  %vm1362_vm6 = vcmask 588800  }
 0x11c   : > { %599 = vst.msk [vmem:[#allocation2 + $0x30] sm:$0xff] %vm592_vm7, %v581_v15 }
 0x11d   : > { %600 = vst.msk [vmem:[#allocation2 + $0x38] sm:$0xff] %vm592_vm7, %v583_v13 }
 0x122   : > { %v631_v17 = vpop.permute.xlu0 %630  ;;  %v633_v18 = vpop.permute.xlu1 %632 }
 0x123   : > { %649 = vst.msk [vmem:[#allocation2 + $0x30] sm:$0xff] %vm642_vm8, %v631_v17 }
 0x124   : > { %650 = vst.msk [vmem:[#allocation2 + $0x38] sm:$0xff] %vm642_vm8, %v633_v18 }
 0x125   : > { %698 = vst.msk [vmem:[#allocation2 + $0x30] sm:$0xff] %vm691_vm9, %v680_v16 }
 0x12a   : > { %v682_v19 = vpop.permute.xlu0 %681 }
 0x12b   : > { %699 = vst.msk [vmem:[#allocation2 + $0x38] sm:$0xff] %vm691_vm9, %v682_v19  ;;  %v983_v55 = vpop.permute.xlu1 %982 }
 0x12c   : > { %v706_v21 = vld [vmem:[#allocation2 + $0x30] sm:$0xff] }
 0x12d   : > { %v718_v23 = vmax.f32 %v706_v21, 0.0 }
 0x132   : > { %v707_v25 = vld [vmem:[#allocation2 + $0x38] sm:$0xff]  ;;  %v934_v54 = vpop.permute.xlu0 %933 }
 0x133   : > { %v711_v26 = vpack.c.bf16 %v707_v25, %v706_v21  ;;  %v719_v27 = vmax.f32 %v707_v25, 0.0  ;;  %958 = vst.msk [vmem:[#allocation4] sm:$0xff] %vm957_vm13, %v934_v54 }
 0x134   : > { %1007 = vst.msk [vmem:[#allocation4] sm:$0xff] %vm1006_vm14, %v983_v55 }
 0x135   : > { %v774_v28 = vpop.f32.mrf.mxu0  ;;  %1568 = vmatmul.msk.bf16.gmra.mxu1 %vm748_vm10, %v711_v26  ;;  %v723_v29 = vpack.c.bf16 %v719_v27, %v718_v23 }
 0x136   : > { %v775_v30 = vadd.f32 %v1943_v24, %v774_v28 }
 0x137   : > { %1556 = vmatmul.msk.bf16.gmra.mxu0 %vm748_vm10, %v723_v29 }
 0x138   : > { %v794_v31 = vmax.f32 %v775_v30, 0.0 }
 0x13a   : > { %893 = vst.msk [vmem:[#allocation3 + $0x11] sm:$0xff] %vm870_vm11, %v794_v31  ;;  %v2011_v6 = vpop.permute.xlu0 %1242 }
 0x13d   : > { %v776_v32 = vpop.f32.mrf.mxu0 }
 0x13e   : > { %v777_v33 = vadd.f32 %v1943_v24, %v776_v32 }
 0x140   : > { %v795_v34 = vmax.f32 %v777_v33, 0.0 }
 0x141   : > { %v1064_v35 = vld [vmem:[#allocation3 + $0x11] sm:$0xff] }
 0x142   : > { %v967_v36 = vld [vmem:[#allocation3 + $0x12] sm:$0xff]  ;;  %894 = vst.msk [vmem:[#allocation3 + $0x21] sm:$0xff] %vm870_vm11, %v795_v34  ;;  %1080 = vrot.lane.b32.xlu0 %v1064_v35, %s1644_s15  ;;  %935 = vrot.lane.b32.xlu1 %v1064_v35, %s1637_s8 }
 0x143   : > { %v1015_v37 = vld [vmem:[#allocation3 + $0x10] sm:$0xff]  ;;  %984 = vrot.lane.b32.xlu2 %v967_v36, %s1640_s11 }
 0x144   : > { %910 = vst.msk [vmem:[#allocation4 + $0x8] sm:$0xff] %vm870_vm11, %v1015_v37 }
 0x149   : > { %v968_v38 = vld [vmem:[#allocation3 + $0x22] sm:$0xff] }
 0x14a   : > { %v1016_v39 = vld [vmem:[#allocation3 + $0x20] sm:$0xff]  ;;  %986 = vrot.lane.b32.xlu0 %v968_v38, %s1640_s11  ;;  %1129 = vrot.lane.b32.xlu1 %v967_v36, %s1648_s14 }
 0x14b   : > { %1031 = vrot.lane.b32.xlu2 %v1015_v37, %s1642_s13  ;;  %911 = vst.msk [vmem:[#allocation4 + $0x10] sm:$0xff] %vm870_vm11, %v1016_v39  ;;  %v919_v40 = vld [vmem:[#allocation3 + $0x21] sm:$0xff] }
 0x14c   : > { %v1330_v37 = vld [vmem:[%s2162_s5 + $0x20] sm:$0xf] }
 0x152   : > { %1033 = vrot.lane.b32.xlu0 %v1016_v39, %s1642_s13  ;;  %937 = vrot.lane.b32.xlu1 %v919_v40, %s1637_s8 }
 0x153   : > { %1131 = vrot.lane.b32.xlu2 %v968_v38, %s1648_s14 }
 0x15a   : > { %1228 = vrot.lane.b32.xlu0 %v919_v40, %s1647_s9  ;;  %1082 = vrot.lane.b32.xlu1 %v919_v40, %s1644_s15 }
 0x15b   : > { %1179 = vrot.lane.b32.xlu2 %v1016_v39, %s1646_s30 }
 0x15d   : > { %v779_v41 = vpop.f32.mrf.mxu0 }
 0x15e   : > { %v780_v42 = vadd.f32 %v1943_v24, %v779_v41 }
 0x160   : > { %v796_v43 = vmax.f32 %v780_v42, 0.0 }
 0x162   : > { %895 = vst.msk [vmem:[#allocation3 + $0x31] sm:$0xff] %vm870_vm11, %v796_v43  ;;  %1277 = vrot.lane.b32.xlu1 %v968_v38, %s1649_s16  ;;  %v1352_v38 = vunpack.c.l.b16 %v1330_v37 }
 0x164   : > { %v1357_v39 = vpack.c.b16 %v1352_v38, %v1352_v38  ;;  %v1628_v38 = vld [vmem:[%s2163_s6] ss:$0 sm:$0xff] }
 0x165   : > { %v781_v44 = vpop.f32.mrf.mxu0 }
 0x166   : > { %v782_v45 = vadd.f32 %v1943_v24, %v781_v44  ;;  %v1377_v42 = vsel %vm1375_vm5, %v1357_v39, 0  ;;  %v1268_v44 = vld [vmem:[#allocation3 + $0x92] sm:$0xff]  ;;  %v1626_v39 = vld [vmem:[%s2161_s4] ss:$0 sm:$0xff] }
 0x167   : > { %1599 = vmatpush.bf16.msra.mxu3 %v1377_v42  ;;  %1382 = vmatpush.bf16.msra.mxu2 %v1377_v42 }
 0x168   : > { %v797_v46 = vmax.f32 %v782_v45, 0.0  ;;  %v1598_v45 = vld [vmem:[%s2162_s5 + $0x18] sm:$0xff] }
 0x169   : > { %v1969_v47 = vld [vmem:[#allocation3 + $0x32] sm:$0xff] }
 0x16a   : > { %v920_v48 = vld [vmem:[#allocation3 + $0x31] sm:$0xff]  ;;  %896 = vst.msk [vmem:[#allocation3 + $0x41] sm:$0xff] %vm870_vm11, %v797_v46  ;;  %1133 = vrot.lane.b32.xlu0 %v1969_v47, %s1648_s14  ;;  %988 = vrot.lane.b32.xlu1 %v1969_v47, %s1640_s11 }
 0x16b   : > { %v1164_v49 = vld [vmem:[#allocation3 + $0x30] sm:$0xff]  ;;  %939 = vrot.lane.b32.xlu2 %v920_v48, %s1637_s8  ;;  %1600 = vmatpush.bf16.msra.mxu3 %v1598_v45 }
 0x16c   : > { %912 = vst.msk [vmem:[#allocation4 + $0x18] sm:$0xff] %vm870_vm11, %v1164_v49  ;;  %v1597_v46 = vld [vmem:[%s2162_s5 + $0x10] sm:$0xff]  ;;  %1383 = vmatpush.bf16.msra.mxu2 %v1598_v45 }
 0x16f   : > { %1601 = vmatpush.bf16.msra.mxu3 %v1597_v46 }
 0x170   : > { %1384 = vmatpush.bf16.msra.mxu2 %v1597_v46 }
 0x171   : > { %v1018_v50 = vld [vmem:[#allocation3 + $0x40] sm:$0xff] }
 0x172   : > { %1181 = vrot.lane.b32.xlu0 %v1164_v49, %s1646_s30  ;;  %913 = vst.msk [vmem:[#allocation4 + $0x20] sm:$0xff] %vm870_vm11, %v1018_v50  ;;  %1084 = vrot.lane.b32.xlu1 %v920_v48, %s1644_s15  ;;  %v1067_v51 = vld [vmem:[#allocation3 + $0x41] sm:$0xff] }
 0x173   : > { %1035 = vrot.lane.b32.xlu2 %v1164_v49, %s1642_s13  ;;  %v1263_v53 = vld [vmem:[#allocation3 + $0x42] sm:$0xff] }
 0x17a   : > { %1037 = vrot.lane.b32.xlu0 %v1018_v50, %s1642_s13  ;;  %1230 = vrot.lane.b32.xlu1 %v920_v48, %s1647_s9 }
 0x17b   : > { %1086 = vrot.lane.b32.xlu2 %v1067_v51, %s1644_s15 }
 0x182   : > { %1281 = vrot.lane.b32.xlu0 %v1263_v53, %s1649_s16  ;;  %1135 = vrot.lane.b32.xlu1 %v1263_v53, %s1648_s14 }
 0x183   : > { %1183 = vrot.lane.b32.xlu2 %v1018_v50, %s1646_s30  ;;  %v1596_v50 = vld [vmem:[%s2162_s5 + $0x8] sm:$0xff] }
 0x184   : > { %1602 = vmatpush.bf16.msra.mxu3 %v1596_v50  ;;  %1385 = vmatpush.bf16.msra.mxu2 %v1596_v50 }
 0x186   : > { %v784_v56 = vpop.f32.mrf.mxu0 }
 0x187   : > { %v785_v57 = vadd.f32 %v1943_v24, %v784_v56 }
 0x189   : > { %v798_v58 = vmax.f32 %v785_v57, 0.0 }
 0x18a   : > { %1232 = vrot.lane.b32.xlu1 %v1067_v51, %s1647_s9 }
 0x18b   : > { %941 = vrot.lane.b32.xlu2 %v1067_v51, %s1637_s8  ;;  %897 = vst.msk [vmem:[#allocation3 + $0x51] sm:$0xff] %vm870_vm11, %v798_v58  ;;  %v1595_v51 = vld [vmem:[%s2162_s5] sm:$0xff] }
 0x18c   : > { %1603 = vmatpush.bf16.msra.mxu3 %v1595_v51  ;;  %1386 = vmatpush.bf16.msra.mxu2 %v1595_v51 }
 0x18e   : > { %v786_v59 = vpop.f32.mrf.mxu0 }
 0x18f   : > { %v787_v60 = vadd.f32 %v1943_v24, %v786_v59 }
 0x191   : > { %v799_v61 = vmax.f32 %v787_v60, 0.0 }
 0x192   : > { %v1166_v62 = vld [vmem:[#allocation3 + $0x50] sm:$0xff]  ;;  %990 = vrot.lane.b32.xlu1 %v1263_v53, %s1640_s11 }
 0x193   : > { %v1215_v63 = vld [vmem:[#allocation3 + $0x51] sm:$0xff]  ;;  %898 = vst.msk [vmem:[#allocation3 + $0x61] sm:$0xff] %vm870_vm11, %v799_v61  ;;  %1185 = vrot.lane.b32.xlu0 %v1166_v62, %s1646_s30 }
 0x194   : > { %1234 = vrot.lane.b32.xlu2 %v1215_v63, %s1647_s9  ;;  %914 = vst.msk [vmem:[#allocation4 + $0x28] sm:$0xff] %vm870_vm11, %v1166_v62  ;;  %v1264_v1 = vld [vmem:[#allocation3 + $0x52] sm:$0xff] }
 0x19a   : > { %v1020_v2 = vld [vmem:[#allocation3 + $0x60] sm:$0xff]  ;;  %1283 = vrot.lane.b32.xlu1 %v1264_v1, %s1649_s16 }
 0x19b   : > { %943 = vrot.lane.b32.xlu0 %v1215_v63, %s1637_s8  ;;  %915 = vst.msk [vmem:[#allocation4 + $0x30] sm:$0xff] %vm870_vm11, %v1020_v2  ;;  %v1069_v5 = vld [vmem:[#allocation3 + $0x61] sm:$0xff] }
 0x19c   : > { %992 = vrot.lane.b32.xlu2 %v1264_v1, %s1640_s11  ;;  %v1118_v7 = vld [vmem:[#allocation3 + $0x62] sm:$0xff] }
 0x19d   : > { %v985_v3 = vpop.permute.xlu2 %984 }
 0x1a2   : > { %1137 = vrot.lane.b32.xlu1 %v1264_v1, %s1648_s14 }
 0x1a3   : > { %1039 = vrot.lane.b32.xlu0 %v1166_v62, %s1642_s13 }
 0x1a4   : > { %1088 = vrot.lane.b32.xlu2 %v1215_v63, %s1644_s15 }
 0x1a5   : > { %v1032_v4 = vpop.permute.xlu2 %1031 }
 0x1a6   : > { %1056 = vst.msk [vmem:[#allocation4] sm:$0xff] %vm1055_vm15, %v1032_v4 }
 0x1aa   : > { %1041 = vrot.lane.b32.xlu1 %v1020_v2, %s1642_s13 }
 0x1ab   : > { %1090 = vrot.lane.b32.xlu0 %v1069_v5, %s1644_s15 }
 0x1ac   : > { %1139 = vrot.lane.b32.xlu2 %v1118_v7, %s1648_s14 }
 0x1ad   : > { %v1132_v8 = vpop.permute.xlu2 %1131 }
 0x1b2   : > { %1285 = vrot.lane.b32.xlu1 %v1118_v7, %s1649_s16 }
 0x1b3   : > { %1187 = vrot.lane.b32.xlu0 %v1020_v2, %s1646_s30 }
 0x1b4   : > { %1236 = vrot.lane.b32.xlu2 %v1069_v5, %s1647_s9  ;;  %v1081_v9 = vpop.permute.xlu0 %1080  ;;  %v936_v10 = vpop.permute.xlu1 %935 }
 0x1b5   : > { %1105 = vst.msk [vmem:[#allocation4] sm:$0xff] %vm1104_vm0, %v1081_v9  ;;  %v789_v11 = vpop.f32.mrf.mxu0  ;;  %v1180_v14 = vpop.permute.xlu2 %1179 }
 0x1b6   : > { %959 = vst.msk [vmem:[#allocation4 + $0x8] sm:$0xff] %vm957_vm13, %v936_v10  ;;  %v790_v12 = vadd.f32 %v1943_v24, %v789_v11 }
 0x1b7   : > { %1008 = vst.msk [vmem:[#allocation4 + $0x8] sm:$0xff] %vm1006_vm14, %v985_v3 }
 0x1b8   : > { %v800_v13 = vmax.f32 %v790_v12, 0.0 }
 0x1ba   : > { %899 = vst.msk [vmem:[#allocation3 + $0x71] sm:$0xff] %vm870_vm11, %v800_v13 }
 0x1bb   : > { %994 = vrot.lane.b32.xlu0 %v1118_v7, %s1640_s11 }
 0x1bc   : > { %945 = vrot.lane.b32.xlu2 %v1069_v5, %s1637_s8  ;;  %v987_v15 = vpop.permute.xlu0 %986  ;;  %v1130_v16 = vpop.permute.xlu1 %1129 }
 0x1bd   : > { %v791_v17 = vpop.f32.mrf.mxu0  ;;  %1154 = vst.msk [vmem:[#allocation4] sm:$0xff] %vm1153_vm1, %v1130_v16 }
 0x1be   : > { %v792_v18 = vadd.f32 %v1943_v24, %v791_v17  ;;  %1204 = vst.msk [vmem:[#allocation4] sm:$0xff] %vm1203_vm2, %v1180_v14 }
 0x1c0   : > { %v801_v19 = vmax.f32 %v792_v18, 0.0 }
 0x1c1   : > { %v1168_v20 = vld [vmem:[#allocation3 + $0x70] sm:$0xff] }
 0x1c2   : > { %v1217_v21 = vld [vmem:[#allocation3 + $0x71] sm:$0xff]  ;;  %900 = vst.msk [vmem:[#allocation3 + $0x81] sm:$0xff] %vm870_vm11, %v801_v19  ;;  %1189 = vrot.lane.b32.xlu1 %v1168_v20, %s1646_s30 }
 0x1c3   : > { %v1266_v22 = vld [vmem:[#allocation3 + $0x72] sm:$0xff]  ;;  %1238 = vrot.lane.b32.xlu0 %v1217_v21, %s1647_s9  ;;  %916 = vst.msk [vmem:[#allocation4 + $0x38] sm:$0xff] %vm870_vm11, %v1168_v20 }
 0x1c4   : > { %1287 = vrot.lane.b32.xlu2 %v1266_v22, %s1649_s16  ;;  %v1034_v23 = vpop.permute.xlu0 %1033  ;;  %v938_v24 = vpop.permute.xlu1 %937 }
 0x1c5   : > { %v940_v25 = vpop.permute.xlu2 %939  ;;  %1057 = vst.msk [vmem:[#allocation4 + $0x8] sm:$0xff] %vm1055_vm15, %v1034_v23 }
 0x1c6   : > { %961 = vst.msk [vmem:[#allocation4 + $0x18] sm:$0xff] %vm957_vm13, %v940_v25 }
 0x1c7   : > { %960 = vst.msk [vmem:[#allocation4 + $0x10] sm:$0xff] %vm957_vm13, %v938_v24 }
 0x1c8   : > { %1009 = vst.msk [vmem:[#allocation4 + $0x10] sm:$0xff] %vm1006_vm14, %v987_v15 }
 0x1c9   : > { %v1022_v29 = vld [vmem:[#allocation3 + $0x80] sm:$0xff] }
 0x1ca   : > { %996 = vrot.lane.b32.xlu1 %v1266_v22, %s1640_s11  ;;  %v1120_v32 = vld [vmem:[#allocation3 + $0x82] sm:$0xff] }
 0x1cb   : > { %947 = vrot.lane.b32.xlu0 %v1217_v21, %s1637_s8  ;;  %v1071_v33 = vld [vmem:[#allocation3 + $0x81] sm:$0xff] }
 0x1cc   : > { %1092 = vrot.lane.b32.xlu2 %v1217_v21, %s1644_s15  ;;  %v1229_v26 = vpop.permute.xlu0 %1228  ;;  %v1083_v28 = vpop.permute.xlu1 %1082 }
 0x1cd   : > { %v1036_v27 = vpop.permute.xlu2 %1035  ;;  %1253 = vst.msk [vmem:[#allocation4] sm:$0xff] %vm1252_vm3, %v1229_v26 }
 0x1ce   : > { %1058 = vst.msk [vmem:[#allocation4 + $0x10] sm:$0xff] %vm1055_vm15, %v1036_v27 }
 0x1cf   : > { %1106 = vst.msk [vmem:[#allocation4 + $0x8] sm:$0xff] %vm1104_vm0, %v1083_v28 }
 0x1d0   : > { %1155 = vst.msk [vmem:[#allocation4 + $0x8] sm:$0xff] %vm1153_vm1, %v1132_v8 }
 0x1d2   : > { %1043 = vrot.lane.b32.xlu1 %v1168_v20, %s1642_s13 }
 0x1d3   : > { %1141 = vrot.lane.b32.xlu0 %v1266_v22, %s1648_s14 }
 0x1d4   : > { %1045 = vrot.lane.b32.xlu2 %v1022_v29, %s1642_s13  ;;  %v1278_v31 = vpop.permute.xlu1 %1277 }
 0x1d5   : > { %v1087_v30 = vpop.permute.xlu2 %1086  ;;  %1302 = vst.msk [vmem:[#allocation4] sm:$0xff] %vm1301_vm4, %v1278_v31 }
 0x1da   : > { %1143 = vrot.lane.b32.xlu1 %v1120_v32, %s1648_s14 }
 0x1db   : > { %1094 = vrot.lane.b32.xlu0 %v1071_v33, %s1644_s15 }
 0x1dc   : > { %1240 = vrot.lane.b32.xlu2 %v1071_v33, %s1647_s9  ;;  %v1134_v34 = vpop.permute.xlu0 %1133  ;;  %v989_v36 = vpop.permute.xlu1 %988  ;;  %v1310_v26 = vld [vmem:[#allocation4] sm:$0xff] }
 0x1dd   : > { %v1184_v35 = vpop.permute.xlu2 %1183  ;;  %1010 = vst.msk [vmem:[#allocation4 + $0x18] sm:$0xff] %vm1006_vm14, %v989_v36 }
 0x1e2   : > { %1191 = vrot.lane.b32.xlu1 %v1022_v29, %s1646_s30  ;;  %s1488_s30 = sshll.u32 %s2168_s23, 3 }
 0x1e3   : > { %1289 = vrot.lane.b32.xlu0 %v1120_v32, %s1649_s16  ;;  %s2136_s12 = scalar_lea.vmem %s2164_s7, %s1488_s30 }
 0x1e4   : > { %1279 = vrot.lane.b32.xlu2 %v1969_v47, %s1649_s16  ;;  %v1182_v40 = vpop.permute.xlu0 %1181  ;;  %v1085_v43 = vpop.permute.xlu1 %1084 }
 0x1e5   : > { %v942_v41 = vpop.permute.xlu2 %941  ;;  %1205 = vst.msk [vmem:[#allocation4 + $0x8] sm:$0xff] %vm1203_vm2, %v1182_v40 }
 0x1e6   : > { %962 = vst.msk [vmem:[#allocation4 + $0x20] sm:$0xff] %vm957_vm13, %v942_v41 }
 0x1e7   : > { %1107 = vst.msk [vmem:[#allocation4 + $0x10] sm:$0xff] %vm1104_vm0, %v1085_v43 }
 0x1e8   : > { %1156 = vst.msk [vmem:[#allocation4 + $0x10] sm:$0xff] %vm1153_vm1, %v1134_v34 }
 0x1e9   : > { %1206 = vst.msk [vmem:[#allocation4 + $0x10] sm:$0xff] %vm1203_vm2, %v1184_v35 }
 0x1ea   : > { %1291 = vrot.lane.b32.xlu1 %v1268_v44, %s1649_s16 }
 0x1ec   : > { %v1038_v47 = vpop.permute.xlu0 %1037  ;;  %v1231_v48 = vpop.permute.xlu1 %1230 }
 0x1ed   : > { %1059 = vst.msk [vmem:[#allocation4 + $0x18] sm:$0xff] %vm1055_vm15, %v1038_v47 }
 0x1ee   : > { %1108 = vst.msk [vmem:[#allocation4 + $0x18] sm:$0xff] %vm1104_vm0, %v1087_v30  ;;  %v1235_v49 = vpop.permute.xlu2 %1234 }
 0x1ef   : > { %1254 = vst.msk [vmem:[#allocation4 + $0x8] sm:$0xff] %vm1252_vm3, %v1231_v48 }
 0x1f4   : > { %v1136_v52 = vpop.permute.xlu1 %1135  ;;  %v1282_v54 = vpop.permute.xlu0 %1281 }
 0x1f5   : > { %1157 = vst.msk [vmem:[#allocation4 + $0x18] sm:$0xff] %vm1153_vm1, %v1136_v52 }
 0x1f6   : > { %v993_v53 = vpop.permute.xlu2 %992 }
 0x1fc   : > { %v1233_v55 = vpop.permute.xlu1 %1232 }
 0x1fd   : > { %1255 = vst.msk [vmem:[#allocation4 + $0x10] sm:$0xff] %vm1252_vm3, %v1233_v55 }
 0x1fe   : > { %v1089_v56 = vpop.permute.xlu2 %1088  ;;  %1304 = vst.msk [vmem:[#allocation4 + $0x10] sm:$0xff] %vm1301_vm4, %v1282_v54 }
 0x204   : > { %v991_v57 = vpop.permute.xlu1 %990 }
 0x205   : > { %v1186_v58 = vpop.permute.xlu0 %1185  ;;  %1011 = vst.msk [vmem:[#allocation4 + $0x20] sm:$0xff] %vm1006_vm14, %v991_v57  ;;  %v1312_v2 = vld [vmem:[#allocation4 + $0x10] sm:$0xff] }
 0x206   : > { %v1140_v59 = vpop.permute.xlu2 %1139  ;;  %1207 = vst.msk [vmem:[#allocation4 + $0x18] sm:$0xff] %vm1203_vm2, %v1186_v58 }
 0x207   : > { %1256 = vst.msk [vmem:[#allocation4 + $0x18] sm:$0xff] %vm1252_vm3, %v1235_v49 }
 0x20c   : > { %v1284_v60 = vpop.permute.xlu1 %1283 }
 0x20d   : > { %v944_v61 = vpop.permute.xlu0 %943  ;;  %1305 = vst.msk [vmem:[#allocation4 + $0x18] sm:$0xff] %vm1301_vm4, %v1284_v60 }
 0x20e   : > { %v1237_v62 = vpop.permute.xlu2 %1236  ;;  %963 = vst.msk [vmem:[#allocation4 + $0x28] sm:$0xff] %vm957_vm13, %v944_v61 }
 0x20f   : > { %1012 = vst.msk [vmem:[#allocation4 + $0x28] sm:$0xff] %vm1006_vm14, %v993_v53 }
 0x214   : > { %v1138_v63 = vpop.permute.xlu1 %1137  ;;  %v1313_v3 = vld [vmem:[#allocation4 + $0x18] sm:$0xff] }
 0x215   : > { %v1040_v1 = vpop.permute.xlu0 %1039  ;;  %v1319_v5 = vpack.c.bf16 %v1313_v3, %v1312_v2 }
 0x216   : > { %1060 = vst.msk [vmem:[#allocation4 + $0x20] sm:$0xff] %vm1055_vm15, %v1040_v1  ;;  %v946_v4 = vpop.permute.xlu2 %945 }
 0x217   : > { %1109 = vst.msk [vmem:[#allocation4 + $0x20] sm:$0xff] %vm1104_vm0, %v1089_v56  ;;  %1586 = vmatmul.msk.bf16.vlgmr.msra.gmra.mxu3 %vm1362_vm6, %v1319_v5 }
 0x218   : > { %1158 = vst.msk [vmem:[#allocation4 + $0x20] sm:$0xff] %vm1153_vm1, %v1138_v63 }
 0x219   : > { %964 = vst.msk [vmem:[#allocation4 + $0x30] sm:$0xff] %vm957_vm13, %v946_v4 }
 0x21c   : > { %v1042_v7 = vpop.permute.xlu1 %1041 }
 0x21d   : > { %v1091_v8 = vpop.permute.xlu0 %1090  ;;  %1061 = vst.msk [vmem:[#allocation4 + $0x28] sm:$0xff] %vm1055_vm15, %v1042_v7 }
 0x21e   : > { %v1288_v9 = vpop.permute.xlu2 %1287  ;;  %1110 = vst.msk [vmem:[#allocation4 + $0x28] sm:$0xff] %vm1104_vm0, %v1091_v8 }
 0x21f   : > { %1159 = vst.msk [vmem:[#allocation4 + $0x28] sm:$0xff] %vm1153_vm1, %v1140_v59 }
 0x224   : > { %v1286_v12 = vpop.permute.xlu1 %1285 }
 0x225   : > { %v1188_v10 = vpop.permute.xlu0 %1187 }
 0x226   : > { %1208 = vst.msk [vmem:[#allocation4 + $0x20] sm:$0xff] %vm1203_vm2, %v1188_v10  ;;  %v1093_v11 = vpop.permute.xlu2 %1092 }
 0x227   : > { %1257 = vst.msk [vmem:[#allocation4 + $0x20] sm:$0xff] %vm1252_vm3, %v1237_v62 }
 0x228   : > { %1306 = vst.msk [vmem:[#allocation4 + $0x20] sm:$0xff] %vm1301_vm4, %v1286_v12 }
 0x22d   : > { %v995_v13 = vpop.permute.xlu0 %994 }
 0x22e   : > { %1013 = vst.msk [vmem:[#allocation4 + $0x30] sm:$0xff] %vm1006_vm14, %v995_v13  ;;  %v1046_v14 = vpop.permute.xlu2 %1045 }
 0x22f   : > { %v1314_v21 = vld [vmem:[#allocation4 + $0x20] sm:$0xff] }
 0x234   : > { %v1190_v15 = vpop.permute.xlu1 %1189 }
 0x235   : > { %1209 = vst.msk [vmem:[#allocation4 + $0x28] sm:$0xff] %vm1203_vm2, %v1190_v15  ;;  %v1239_v16 = vpop.permute.xlu0 %1238 }
 0x236   : > { %1258 = vst.msk [vmem:[#allocation4 + $0x28] sm:$0xff] %vm1252_vm3, %v1239_v16  ;;  %v1241_v17 = vpop.permute.xlu2 %1240 }
 0x237   : > { %1307 = vst.msk [vmem:[#allocation4 + $0x28] sm:$0xff] %vm1301_vm4, %v1288_v9 }
 0x23c   : > { %v997_v18 = vpop.permute.xlu1 %996 }
 0x23d   : > { %v948_v19 = vpop.permute.xlu0 %947 }
 0x23e   : > { %965 = vst.msk [vmem:[#allocation4 + $0x38] sm:$0xff] %vm957_vm13, %v948_v19  ;;  %v1280_v20 = vpop.permute.xlu2 %1279  ;;  %v1315_v22 = vld [vmem:[#allocation4 + $0x28] sm:$0xff] }
 0x23f   : > { %1014 = vst.msk [vmem:[#allocation4 + $0x38] sm:$0xff] %vm1006_vm14, %v997_v18  ;;  %v1320_v23 = vpack.c.bf16 %v1315_v22, %v1314_v21 }
 0x240   : > { %1063 = vst.msk [vmem:[#allocation4 + $0x38] sm:$0xff] %vm1055_vm15, %v1046_v14 }
 0x241   : > { %1303 = vst.msk [vmem:[#allocation4 + $0x8] sm:$0xff] %vm1301_vm4, %v1280_v20  ;;  %1587 = vmatmul.msk.bf16.gmra.mxu3 %vm1362_vm6, %v1320_v23 }
 0x244   : > { %v1044_v25 = vpop.permute.xlu1 %1043 }
 0x245   : > { %1062 = vst.msk [vmem:[#allocation4 + $0x30] sm:$0xff] %vm1055_vm15, %v1044_v25  ;;  %v1142_v24 = vpop.permute.xlu0 %1141 }
 0x246   : > { %1111 = vst.msk [vmem:[#allocation4 + $0x30] sm:$0xff] %vm1104_vm0, %v1093_v11 }
 0x247   : > { %1160 = vst.msk [vmem:[#allocation4 + $0x30] sm:$0xff] %vm1153_vm1, %v1142_v24 }
 0x248   : > { %v1311_v27 = vld [vmem:[#allocation4 + $0x8] sm:$0xff] }
 0x249   : > { %v1318_v28 = vpack.c.bf16 %v1311_v27, %v1310_v26 }
 0x24b   : > { %1585 = vmatmul.msk.bf16.vlgmr.msra.gmra.mxu2 %vm1362_vm6, %v1318_v28 }
 0x24c   : > { %v1144_v29 = vpop.permute.xlu1 %1143 }
 0x24d   : > { %v1095_v30 = vpop.permute.xlu0 %1094 }
 0x24e   : > { %1112 = vst.msk [vmem:[#allocation4 + $0x38] sm:$0xff] %vm1104_vm0, %v1095_v30 }
 0x24f   : > { %1161 = vst.msk [vmem:[#allocation4 + $0x38] sm:$0xff] %vm1153_vm1, %v1144_v29 }
 0x250   : > { %1211 = vst.msk [vmem:[#allocation4 + $0x38] sm:$0xff] %vm1203_vm2, %v1996_v0  ;;  %v850_v0 = vpop.f32.mrf.mxu1 }
 0x251   : > { %1260 = vst.msk [vmem:[#allocation4 + $0x38] sm:$0xff] %vm1252_vm3, %v2011_v6  ;;  %v851_v59 = vadd.f32 %v1626_v39, %v850_v0 }
 0x254   : > { %v1192_v31 = vpop.permute.xlu1 %1191 }
 0x255   : > { %1210 = vst.msk [vmem:[#allocation4 + $0x30] sm:$0xff] %vm1203_vm2, %v1192_v31  ;;  %v1290_v32 = vpop.permute.xlu0 %1289 }
 0x256   : > { %1259 = vst.msk [vmem:[#allocation4 + $0x30] sm:$0xff] %vm1252_vm3, %v1241_v17 }
 0x257   : > { %1308 = vst.msk [vmem:[#allocation4 + $0x30] sm:$0xff] %vm1301_vm4, %v1290_v32 }
 0x258   : > { %v852_v37 = vpop.f32.mrf.mxu1 }
 0x259   : > { %v853_v1 = vadd.f32 %v1626_v39, %v852_v37 }
 0x25c   : > { %v1292_v33 = vpop.permute.xlu1 %1291 }
 0x25d   : > { %1309 = vst.msk [vmem:[#allocation4 + $0x38] sm:$0xff] %vm1301_vm4, %v1292_v33 }
 0x25e   : > { %v1316_v34 = vld [vmem:[#allocation4 + $0x30] sm:$0xff] }
 0x260   : > { %v855_v6 = vpop.f32.mrf.mxu1 }
 0x261   : > { %v856_v41 = vadd.f32 %v1626_v39, %v855_v6 }
 0x264   : > { %v1317_v35 = vld [vmem:[#allocation4 + $0x38] sm:$0xff] }
 0x265   : > { %v1321_v36 = vpack.c.bf16 %v1317_v35, %v1316_v34 }
 0x267   : > { %1588 = vmatmul.msk.bf16.gmra.mxu3 %vm1362_vm6, %v1321_v36 }
 0x268   : > { %v857_v44 = vpop.f32.mrf.mxu1 }
 0x269   : > { %v858_v46 = vadd.f32 %v1626_v39, %v857_v44 }
 0x270   : > { %v860_v49 = vpop.f32.mrf.mxu1 }
 0x271   : > { %v861_v51 = vadd.f32 %v1626_v39, %v860_v49 }
 0x278   : > { %v862_v54 = vpop.f32.mrf.mxu1 }
 0x279   : > { %v863_v56 = vadd.f32 %v1626_v39, %v862_v54 }
 0x280   : > { %v865_v4 = vpop.f32.mrf.mxu1 }
 0x281   : > { %v866_v7 = vadd.f32 %v1626_v39, %v865_v4 }
 0x288   : > { %v867_v10 = vpop.f32.mrf.mxu1 }
 0x289   : > { %v868_v12 = vadd.f32 %v1626_v39, %v867_v10 }
 0x29a   : > { %v1393_v40 = vpop.f32.mrf.mxu3 }
 0x29b   : > { %v1394_v42 = vadd.f32 %v1628_v38, %v1393_v40 }
 0x29d   : > { %v1410_v43 = vadd.f32 %v1394_v42, %v856_v41 }
 0x29f   : > { %1418 = vst.msk [vmem:[%s2136_s12 + $0x10] sm:$0xff] %vm870_vm11, %v1410_v43 }
 0x2a2   : > { %v1395_v45 = vpop.f32.mrf.mxu3 }
 0x2a3   : > { %v1396_v47 = vadd.f32 %v1628_v38, %v1395_v45 }
 0x2a5   : > { %v1411_v48 = vadd.f32 %v1396_v47, %v858_v46 }
 0x2a7   : > { %1419 = vst.msk [vmem:[%s2136_s12 + $0x18] sm:$0xff] %vm870_vm11, %v1411_v48 }
 0x2c4   : > { %v1398_v50 = vpop.f32.mrf.mxu3 }
 0x2c5   : > { %v1399_v52 = vadd.f32 %v1628_v38, %v1398_v50 }
 0x2c7   : > { %v1412_v53 = vadd.f32 %v1399_v52, %v861_v51 }
 0x2c9   : > { %1420 = vst.msk [vmem:[%s2136_s12 + $0x20] sm:$0xff] %vm870_vm11, %v1412_v53 }
 0x2cc   : > { %v1400_v55 = vpop.f32.mrf.mxu3 }
 0x2cd   : > { %v1401_v57 = vadd.f32 %v1628_v38, %v1400_v55 }
 0x2ce   : > { %v1388_v58 = vpop.f32.mrf.mxu2 }
 0x2cf   : > { %v1389_v60 = vadd.f32 %v1628_v38, %v1388_v58  ;;  %v1413_v61 = vadd.f32 %v1401_v57, %v863_v56 }
 0x2d1   : > { %v1408_v62 = vadd.f32 %v1389_v60, %v851_v59  ;;  %1421 = vst.msk [vmem:[%s2136_s12 + $0x28] sm:$0xff] %vm870_vm11, %v1413_v61 }
 0x2d3   : > { %1416 = vst.msk [vmem:[%s2136_s12] sm:$0xff] %vm870_vm11, %v1408_v62 }
 0x2d6   : > { %v1390_v63 = vpop.f32.mrf.mxu2 }
 0x2d7   : > { %v1391_v2 = vadd.f32 %v1628_v38, %v1390_v63 }
 0x2d9   : > { %v1409_v3 = vadd.f32 %v1391_v2, %v853_v1 }
 0x2db   : > { %1417 = vst.msk [vmem:[%s2136_s12 + $0x8] sm:$0xff] %vm870_vm11, %v1409_v3 }
 0x2ea   : > { %v1403_v5 = vpop.f32.mrf.mxu3 }
 0x2eb   : > { %v1404_v8 = vadd.f32 %v1628_v38, %v1403_v5 }
 0x2ed   : > { %v1414_v9 = vadd.f32 %v1404_v8, %v866_v7 }
 0x2ef   : > { %1422 = vst.msk [vmem:[%s2136_s12 + $0x30] sm:$0xff] %vm870_vm11, %v1414_v9 }
 0x2f2   : > { %v1405_v11 = vpop.f32.mrf.mxu3 }
 0x2f3   : > { %v1406_v13 = vadd.f32 %v1628_v38, %v1405_v11 }
 0x2f5   : > { %v1415_v14 = vadd.f32 %v1406_v13, %v868_v12 }
 0x2f7   : > { %1423 = vst.msk [vmem:[%s2136_s12 + $0x38] sm:$0xff] %vm870_vm11, %v1415_v14 }
 0x2f8 PF: > { %s17_s24 = sadd.s32 1, %s1635_s24  }
 0x2f9   : > { %p14_p5 = scmp.ge.s32.totalorder %s17_s24, 4  }
 0x2fb   :  { %16 = sbr.rel (!%p14_p5) target bundleno = 1 (0x1), region = 85 }

</bundles_post_ra>
